<compile_context>
chip_gen: v7x
topology: tpu7x:2x2x1
jax: 0.10.0
libtpu: 0.0.40
codegen_flags: <defaults>
</compile_context>

<pallas_src>
import jax
import jax.numpy as jnp
from jax.experimental import pallas as pl
from jax.experimental.pallas import tpu as pltpu

HIDDEN_1 = 256
HIDDEN_2 = 512
OUTPUT_DIM = 4          # model_args.output_num (synthetic choice)
OUT_PAD = 128           # lane-dense padded output width
OUT_DROPOUT = 0.1       # model_args.out_dropout (unused: eval mode)


def fusion_kernel(a_ref, v_ref,
                  w1a_ref, w1v_ref, b1_ref,
                  w2_ref, b2_ref,
                  w3_ref, b3_ref,
                  o_ref):
    # projav1 on the (virtually) concatenated features: split-weight matmuls.
    # bf16 MXU inputs, f32 accumulation; f32 bias added post-accumulation.
    h1 = (jnp.dot(a_ref[...], w1a_ref[...], preferred_element_type=jnp.float32)
          + jnp.dot(v_ref[...], w1v_ref[...], preferred_element_type=jnp.float32)
          + b1_ref[...])
    h1 = jnp.maximum(h1, 0.0).astype(jnp.bfloat16)   # F.relu
    # TODO(synk): F.dropout is identity in eval mode (training=False); training-mode
    #             dropout would need pltpu.prng_random_bits + masking here.
    h2 = jnp.dot(h1, w2_ref[...], preferred_element_type=jnp.float32) + b2_ref[...]
    h2 = h2.astype(jnp.bfloat16)
    out = jnp.dot(h2, w3_ref[...], preferred_element_type=jnp.float32) + b3_ref[...]
    o_ref[...] = out.astype(o_ref.dtype)             # lane-dense (bm, 128) store


def multitask_fusion(feats_a, feats_v, params, *, bm=None):
    """feats_a, feats_v: (B, 512) float32. Returns (B, OUTPUT_DIM) float32."""
    B = feats_a.shape[0]
    if bm is None:
        # Big tile for MXU-row utilization, but keep grid >= 2 when possible so
        # the batch axis can shard across both v7x TensorCores.
        bm = 128 if B >= 256 else max(8, min(128, ((B + 7) // 8) * 8))
    assert bm % 8 == 0, bm

    # Zero-pad batch to a multiple of bm so any B is accepted.
    B_pad = ((B + bm - 1) // bm) * bm
    w1a, w1v, b1, w2, b2, w3p, b3p = params
    out_pad = w3p.shape[1]

    a16 = feats_a.astype(jnp.bfloat16)
    v16 = feats_v.astype(jnp.bfloat16)
    if B_pad != B:
        a16 = jnp.pad(a16, ((0, B_pad - B), (0, 0)))
        v16 = jnp.pad(v16, ((0, B_pad - B), (0, 0)))

    full = lambda i: (0, 0)   # weights/biases: single resident block

    out_padded = pl.pallas_call(
        fusion_kernel,
        out_shape=jax.ShapeDtypeStruct((B_pad, out_pad), jnp.float32),
        grid_spec=pltpu.PrefetchScalarGridSpec(
            num_scalar_prefetch=0,
            grid=(B_pad // bm,),
            in_specs=[
                pl.BlockSpec((bm, HIDDEN_2), lambda i: (i, 0)),       # feats_a (bf16)
                pl.BlockSpec((bm, HIDDEN_2), lambda i: (i, 0)),       # feats_v (bf16)
                pl.BlockSpec((HIDDEN_2, HIDDEN_2), full),             # W1[:512] (bf16)
                pl.BlockSpec((HIDDEN_2, HIDDEN_2), full),             # W1[512:] (bf16)
                pl.BlockSpec((1, HIDDEN_2), full),                    # b1 (f32)
                pl.BlockSpec((HIDDEN_2, HIDDEN_1), full),             # W2 (bf16)
                pl.BlockSpec((1, HIDDEN_1), full),                    # b2 (f32)
                pl.BlockSpec((HIDDEN_1, out_pad), full),              # W3 padded (bf16)
                pl.BlockSpec((1, out_pad), full),                     # b3 padded (f32)
            ],
            out_specs=pl.BlockSpec((bm, out_pad), lambda i: (i, 0)),
        ),
        compiler_params=pltpu.CompilerParams(
            dimension_semantics=("parallel",)),
    )(a16, v16, w1a, w1v, b1, w2, b2, w3p, b3p)

    # Undo the lane padding of the output layer (and any batch padding).
    return out_padded[:B, :OUTPUT_DIM]


def init_params(key):
    """Deterministic init.  Weights stored as (in, out) = PyTorch W.T."""
    k = jax.random.split(key, 6)
    s1 = 1.0 / jnp.sqrt(2 * HIDDEN_2)
    s2 = 1.0 / jnp.sqrt(HIDDEN_2)
    s3 = 1.0 / jnp.sqrt(HIDDEN_1)
    w1 = jax.random.uniform(k[0], (2 * HIDDEN_2, HIDDEN_2), jnp.float32, -s1, s1)
    b1 = jax.random.uniform(k[1], (1, HIDDEN_2), jnp.float32, -s1, s1)
    w2 = jax.random.uniform(k[2], (HIDDEN_2, HIDDEN_1), jnp.float32, -s2, s2)
    b2 = jax.random.uniform(k[3], (1, HIDDEN_1), jnp.float32, -s2, s2)
    w3 = jax.random.uniform(k[4], (HIDDEN_1, OUTPUT_DIM), jnp.float32, -s3, s3)
    b3 = jax.random.uniform(k[5], (1, OUTPUT_DIM), jnp.float32, -s3, s3)

    # Kernel-side params: bf16 weights, f32 biases, output layer zero-padded
    # to 128 lanes for lane-dense stores.
    w1a = w1[:HIDDEN_2].astype(jnp.bfloat16)
    w1v = w1[HIDDEN_2:].astype(jnp.bfloat16)
    w2k = w2.astype(jnp.bfloat16)
    w3p = jnp.zeros((HIDDEN_1, OUT_PAD), jnp.float32).at[:, :OUTPUT_DIM].set(w3)
    w3p = w3p.astype(jnp.bfloat16)
    b3p = jnp.zeros((1, OUT_PAD), jnp.float32).at[:, :OUTPUT_DIM].set(b3)

    kernel_params = (w1a, w1v, b1, w2k, b2, w3p, b3p)
    raw_params = (w1, b1, w2, b2, w3, b3)
    return kernel_params, raw_params


def reference(feats_a, feats_v, raw):
    w1, b1, w2, b2, w3, b3 = raw
    feats = jnp.concatenate([feats_a, feats_v], axis=1)
    h1 = jnp.maximum(feats @ w1 + b1, 0.0)
    h2 = h1 @ w2 + b2
    return h2 @ w3 + b3


if __name__ == "__main__":
    key = jax.random.PRNGKey(0)
    kp, ka, kv = jax.random.split(key, 3)

    B = 256   # bm=128 -> 2 grid steps (batch axis can shard across both v7x TCs)
    feats_a = jax.random.normal(ka, (B, HIDDEN_2), jnp.float32)
    feats_v = jax.random.normal(kv, (B, HIDDEN_2), jnp.float32)

    params, raw = init_params(kp)

    out = multitask_fusion(feats_a, feats_v, params)
    out = jax.block_until_ready(out)

    ref = reference(feats_a, feats_v, raw)
    assert out.shape == (B, OUTPUT_DIM), out.shape
    # bf16 MXU inputs vs f32 reference -> loosened tolerance.
    assert jnp.allclose(out, ref, atol=2e-2, rtol=2e-2), (
        float(jnp.max(jnp.abs(out - ref))))

    print("KERNEL_OK")
</pallas_src>

<mosaic_0001>
module attributes {stable_mosaic.version = 11 : i64} {
  func.func @fusion_kernel(%arg0: i32, %arg1: memref<128x512xbf16, #tpu.memory_space<vmem>>, %arg2: memref<128x512xbf16, #tpu.memory_space<vmem>>, %arg3: memref<512x512xbf16, #tpu.memory_space<vmem>>, %arg4: memref<512x512xbf16, #tpu.memory_space<vmem>>, %arg5: memref<1x512xf32, #tpu.memory_space<vmem>>, %arg6: memref<512x256xbf16, #tpu.memory_space<vmem>>, %arg7: memref<1x256xf32, #tpu.memory_space<vmem>>, %arg8: memref<256x128xbf16, #tpu.memory_space<vmem>>, %arg9: memref<1x128xf32, #tpu.memory_space<vmem>>, %arg10: memref<128x128xf32, #tpu.memory_space<vmem>>) attributes {dimension_semantics = [#tpu.dimension_semantics<parallel>], iteration_bounds = array<i64: 2>, scalar_prefetch = 0 : i64, scratch_operands = 0 : i64, tpu.core_type = #tpu.core_type<tc>, window_params = [{transform_indices = @transform_0, window_bounds = array<i64: 128, 512>}, {transform_indices = @transform_1, window_bounds = array<i64: 128, 512>}, {pipeline_mode = #tpu.pipeline_mode<synchronous>, transform_indices = @transform_2, window_bounds = array<i64: 512, 512>}, {pipeline_mode = #tpu.pipeline_mode<synchronous>, transform_indices = @transform_3, window_bounds = array<i64: 512, 512>}, {pipeline_mode = #tpu.pipeline_mode<synchronous>, transform_indices = @transform_4, window_bounds = array<i64: 1, 512>}, {pipeline_mode = #tpu.pipeline_mode<synchronous>, transform_indices = @transform_5, window_bounds = array<i64: 512, 256>}, {pipeline_mode = #tpu.pipeline_mode<synchronous>, transform_indices = @transform_6, window_bounds = array<i64: 1, 256>}, {pipeline_mode = #tpu.pipeline_mode<synchronous>, transform_indices = @transform_7, window_bounds = array<i64: 256, 128>}, {pipeline_mode = #tpu.pipeline_mode<synchronous>, transform_indices = @transform_8, window_bounds = array<i64: 1, 128>}, {transform_indices = @transform_9, window_bounds = array<i64: 128, 128>}]} {
    %c0 = arith.constant 0 : index
    %c0_0 = arith.constant 0 : index
    %0 = vector.load %arg1[%c0, %c0_0] : memref<128x512xbf16, #tpu.memory_space<vmem>>, vector<128x512xbf16>
    %c0_1 = arith.constant 0 : index
    %c0_2 = arith.constant 0 : index
    %1 = vector.load %arg3[%c0_1, %c0_2] : memref<512x512xbf16, #tpu.memory_space<vmem>>, vector<512x512xbf16>
    %cst = arith.constant dense<0.000000e+00> : vector<128x512xf32>
    %2 = tpu.matmul %0, %1, %cst {dimension_numbers = #tpu.dot_dimension_numbers<[1], [0], [0], [1], [0, 0, 1, 1], [], []>} : vector<128x512xbf16>, vector<512x512xbf16>, vector<128x512xf32> -> vector<128x512xf32>
    %c0_3 = arith.constant 0 : index
    %c0_4 = arith.constant 0 : index
    %3 = vector.load %arg2[%c0_3, %c0_4] : memref<128x512xbf16, #tpu.memory_space<vmem>>, vector<128x512xbf16>
    %c0_5 = arith.constant 0 : index
    %c0_6 = arith.constant 0 : index
    %4 = vector.load %arg4[%c0_5, %c0_6] : memref<512x512xbf16, #tpu.memory_space<vmem>>, vector<512x512xbf16>
    %cst_7 = arith.constant dense<0.000000e+00> : vector<128x512xf32>
    %5 = tpu.matmul %3, %4, %cst_7 {dimension_numbers = #tpu.dot_dimension_numbers<[1], [0], [0], [1], [0, 0, 1, 1], [], []>} : vector<128x512xbf16>, vector<512x512xbf16>, vector<128x512xf32> -> vector<128x512xf32>
    %6 = arith.addf %2, %5 : vector<128x512xf32>
    %c0_8 = arith.constant 0 : index
    %c0_9 = arith.constant 0 : index
    %7 = vector.load %arg5[%c0_8, %c0_9] : memref<1x512xf32, #tpu.memory_space<vmem>>, vector<1x512xf32>
    %8 = vector.broadcast %7 : vector<1x512xf32> to vector<128x512xf32>
    %9 = arith.addf %6, %8 : vector<128x512xf32>
    %cst_10 = arith.constant 0.000000e+00 : f32
    %10 = vector.broadcast %cst_10 : f32 to vector<128x512xf32>
    %11 = arith.maximumf %9, %10 : vector<128x512xf32>
    %12 = arith.truncf %11 : vector<128x512xf32> to vector<128x512xbf16>
    %c0_11 = arith.constant 0 : index
    %c0_12 = arith.constant 0 : index
    %13 = vector.load %arg6[%c0_11, %c0_12] : memref<512x256xbf16, #tpu.memory_space<vmem>>, vector<512x256xbf16>
    %cst_13 = arith.constant dense<0.000000e+00> : vector<128x256xf32>
    %14 = tpu.matmul %12, %13, %cst_13 {dimension_numbers = #tpu.dot_dimension_numbers<[1], [0], [0], [1], [0, 0, 1, 1], [], []>} : vector<128x512xbf16>, vector<512x256xbf16>, vector<128x256xf32> -> vector<128x256xf32>
    %c0_14 = arith.constant 0 : index
    %c0_15 = arith.constant 0 : index
    %15 = vector.load %arg7[%c0_14, %c0_15] : memref<1x256xf32, #tpu.memory_space<vmem>>, vector<1x256xf32>
    %16 = vector.broadcast %15 : vector<1x256xf32> to vector<128x256xf32>
    %17 = arith.addf %14, %16 : vector<128x256xf32>
    %18 = arith.truncf %17 : vector<128x256xf32> to vector<128x256xbf16>
    %c0_16 = arith.constant 0 : index
    %c0_17 = arith.constant 0 : index
    %19 = vector.load %arg8[%c0_16, %c0_17] : memref<256x128xbf16, #tpu.memory_space<vmem>>, vector<256x128xbf16>
    %cst_18 = arith.constant dense<0.000000e+00> : vector<128x128xf32>
    %20 = tpu.matmul %18, %19, %cst_18 {dimension_numbers = #tpu.dot_dimension_numbers<[1], [0], [0], [1], [0, 0, 1, 1], [], []>} : vector<128x256xbf16>, vector<256x128xbf16>, vector<128x128xf32> -> vector<128x128xf32>
    %c0_19 = arith.constant 0 : index
    %c0_20 = arith.constant 0 : index
    %21 = vector.load %arg9[%c0_19, %c0_20] : memref<1x128xf32, #tpu.memory_space<vmem>>, vector<1x128xf32>
    %22 = vector.broadcast %21 : vector<1x128xf32> to vector<128x128xf32>
    %23 = arith.addf %20, %22 : vector<128x128xf32>
    %c0_21 = arith.constant 0 : index
    %c0_22 = arith.constant 0 : index
    %24 = vector.load %arg10[%c0_21, %c0_22] : memref<128x128xf32, #tpu.memory_space<vmem>>, vector<128x128xf32>
    tpu.vector_store %arg10[%c0_21, %c0_22], %23 {strides = array<i32>} : memref<128x128xf32, #tpu.memory_space<vmem>>, vector<128x128xf32>,
    return
  }
  func.func @transform_0(%arg0: i32) -> (i32, i32) {
    %c0_i32 = arith.constant 0 : i32
    %c0_i32_0 = arith.constant 0 : i32
    return %arg0, %c0_i32 : i32, i32
  }
  func.func @transform_1(%arg0: i32) -> (i32, i32) {
    %c0_i32 = arith.constant 0 : i32
    %c0_i32_0 = arith.constant 0 : i32
    return %arg0, %c0_i32 : i32, i32
  }
  func.func @transform_2(%arg0: i32) -> (i32, i32) {
    %c0_i32 = arith.constant 0 : i32
    %c0_i32_0 = arith.constant 0 : i32
    %c0_i32_1 = arith.constant 0 : i32
    return %c0_i32, %c0_i32_0 : i32, i32
  }
  func.func @transform_3(%arg0: i32) -> (i32, i32) {
    %c0_i32 = arith.constant 0 : i32
    %c0_i32_0 = arith.constant 0 : i32
    %c0_i32_1 = arith.constant 0 : i32
    return %c0_i32, %c0_i32_0 : i32, i32
  }
  func.func @transform_4(%arg0: i32) -> (i32, i32) {
    %c0_i32 = arith.constant 0 : i32
    %c0_i32_0 = arith.constant 0 : i32
    %c0_i32_1 = arith.constant 0 : i32
    return %c0_i32, %c0_i32_0 : i32, i32
  }
  func.func @transform_5(%arg0: i32) -> (i32, i32) {
    %c0_i32 = arith.constant 0 : i32
    %c0_i32_0 = arith.constant 0 : i32
    %c0_i32_1 = arith.constant 0 : i32
    return %c0_i32, %c0_i32_0 : i32, i32
  }
  func.func @transform_6(%arg0: i32) -> (i32, i32) {
    %c0_i32 = arith.constant 0 : i32
    %c0_i32_0 = arith.constant 0 : i32
    %c0_i32_1 = arith.constant 0 : i32
    return %c0_i32, %c0_i32_0 : i32, i32
  }
  func.func @transform_7(%arg0: i32) -> (i32, i32) {
    %c0_i32 = arith.constant 0 : i32
    %c0_i32_0 = arith.constant 0 : i32
    %c0_i32_1 = arith.constant 0 : i32
    return %c0_i32, %c0_i32_0 : i32, i32
  }
  func.func @transform_8(%arg0: i32) -> (i32, i32) {
    %c0_i32 = arith.constant 0 : i32
    %c0_i32_0 = arith.constant 0 : i32
    %c0_i32_1 = arith.constant 0 : i32
    return %c0_i32, %c0_i32_0 : i32, i32
  }
  func.func @transform_9(%arg0: i32) -> (i32, i32) {
    %c0_i32 = arith.constant 0 : i32
    %c0_i32_0 = arith.constant 0 : i32
    return %arg0, %c0_i32 : i32, i32
  }
}

</mosaic_0001>

<bundles_post_ra>
// kernel: tpu_custom_call.1
= control target key start
LH: loop header
LB: loop body
LE: loop exit
PB: predicated region body
PF: predicated region fallthrough
CT: control target
= control target key end

     0   :  { %s7075_s0 = inlined_call_operand.hbm [shape: bf16[256,512], index: 0, kind: input, shape index: {}]   ;;  %s7076_s1 = inlined_call_operand.hbm [shape: bf16[256,512], index: 1, kind: input, shape index: {}]   ;;  %s7077_s2 = inlined_call_operand.hbm [shape: bf16[512,512], index: 2, kind: input, shape index: {}]   ;;  %s7078_s3 = inlined_call_operand.hbm [shape: bf16[512,512], index: 3, kind: input, shape index: {}]   ;;  %s7079_s4 = inlined_call_operand.vmem [shape: f32[1,512], index: 4, kind: input, shape index: {}]   ;;  %s7080_s5 = inlined_call_operand.hbm [shape: bf16[512,256], index: 5, kind: input, shape index: {}]   ;;  %s7081_s6 = inlined_call_operand.vmem [shape: f32[1,256], index: 6, kind: input, shape index: {}]   ;;  %s7082_s7 = inlined_call_operand.hbm [shape: bf16[256,128], index: 7, kind: input, shape index: {}]   ;;  %s7083_s8 = inlined_call_operand.vmem [shape: f32[1,128], index: 8, kind: input, shape index: {}]   ;;  %s7084_s9 = inlined_call_operand.hbm [shape: f32[256,128], index: 9, kind: output, shape index: {}]  }
   0x1   :  { %7095 = sst [smem:[#allocation22_spill]] %s7075_s0 }
   0x2   :  { %7096 = sst [smem:[#allocation23_spill]] %s7077_s2 }
   0x3   :  { %7097 = sst [smem:[#allocation24_spill]] %s7078_s3 }
   0x4   :  { %7098 = sst [smem:[#allocation25_spill]] %s7084_s9 }
   0x5   :  { %14 = vsyncpa [#allocation3], 0 }
   0x6   :  { %16 = vsyncpa [#allocation3 + $0x1], 0 }
   0x7   :  { %17 = vsyncpa [#allocation6], 0 }
   0x8   :  { %19 = vsyncpa [#allocation6 + $0x1], 0 }
   0x9   :  { %20 = vsyncpa [#allocation9], 0 }
   0xa   :  { %21 = vsyncpa [#allocation12], 0 }
   0xb   :  { %22 = vsyncpa [#allocation4], 0 }
   0xc   :  { %24 = vsyncpa [#allocation4 + $0x1], 0  ;;  %s6294_s30 = smov 0   ;;  %s6296_s10 = smov 0  }
   0xd   :  { %s6298_s11 = smov 0   ;;  %s6300_s12 = smov 0  }
   0xe LB: > { %7099 = sst [smem:[#allocation20_spill]] %s6215_s30  ;;  %s6315_s13 = sadd.s32 4294967295, %s6227_s12   ;;  %s6227_s12 = sphi %s6300_s12, %s7130_s12   ;;  %s6223_s11 = sphi %s6298_s11, %s7129_s11   ;;  %s6219_s10 = sphi %s6296_s10, %s7128_s10   ;;  %s6215_s30 = sphi %s6294_s30, %s7127_s30  }
   0xf   : > { %s4495_s14 = sadd.s32 4294967294, %s6227_s12   ;;  %p50_p0 = scmp.ne.s32.totalorder %s6219_s10, %s6215_s30 }
  0x10   : > { %p7085_p1 = scmp.eq.s32.totalorder %s6315_s13, 0  ;;  %p253_p3 = scmp.eq.s32.totalorder %s4495_s14, 1 }
  0x11   : > { %p4496_p5 = scmp.ge.s32.totalorder %s6227_s12, 1  ;;  %p260_p7 = scmp.lt.s32.totalorder %s6227_s12, 3 }
  0x12   : > { %p6324_p4 = por %p7085_p1, %p50_p0  ;;  %p6329_p6 = por %p253_p3, %p50_p0 }
  0x13   : > { %p6334_p8 = pnand %p4496_p5, %p260_p7  ;;  %s6229_s18 = smov [#allocation7]  }
  0x14   : > { %s7100_s15 = scalar_select %p6324_p4, 1, 0 }
  0x15   : > { %s7101_s16 = scalar_select %p6329_p6, 1, 0 }
  0x16   : > { %s7103_s17 = scalar_select %p6334_p8, 1, 0 }
  0x17   : > { %7102 = sst [smem:[#allocation21_spill]] %s7101_s16  ;;  %s272_s19 = sshll.u32 %s6229_s18, 4  ;;  %s6338_s19 = int_to_ptr.vmem [resolvable:$true] %s272_s19 }
  0x18   : > { %p5303_p9 = pneg %p6334_p8  ;;  %s6230_s21 = smov [#allocation8]  }
  0x19   : > { %s285_s22 = sshll.u32 %s6230_s21, 4  ;;  %s6231_s23 = smov [#allocation10]   ;;  %s6349_s22 = int_to_ptr.vmem [resolvable:$true] %s285_s22 }
  0x1a   : > { %p6345_p11 = pnand %p5303_p9, %p7085_p1  ;;  %s6351_s24 = sshll.u32 %s6231_s23, 4  ;;  %s302_s24 = int_to_ptr.vmem [resolvable:$true] %s6351_s24 }
  0x1b   : > { %s7105_s2 = sld [smem:[#allocation23_spill]] }
  0x1c   : > { %p6361_p13 = pneg %p6345_p11 }
  0x21   : > { %s5973_s27 = scalar_lea.hbm %s7105_s2, 16384 }
  0x22   : > { %p5974_p12 = scmp.ne.s32.totalorder %s7105_s2, %s5973_s27  ;;  %p5980_p5 = scmp.lt.u32.totalorder %s5973_s27, %s7105_s2 }
  0x24   : > { %p5976_p0 = pnand %p6361_p13, %p5974_p12 }
  0x26   : > { %p5977_p3 = pneg %p5976_p0 }
  0x28   : > { %p5982_p7 = pnand %p5980_p5, %p5977_p3 }
  0x2a   : > { %5985 = shalt.err (!%p5982_p7)
}
  0x2b   : > { %s5986_s23 = scalar_lea.vmem %s6338_s19, 16384  ;;  %p5994_p2 = scmp.lt.s32.totalorder %s6338_s19, %s6338_s19 }
  0x2c   : > { %p5987_p9 = scmp.ne.s32.totalorder %s6338_s19, %s5986_s23  ;;  %p5995_p6 = scmp.lt.s32.totalorder %s5986_s23, %s5986_s23 }
  0x2e   : > { %p5989_p10 = pnand %p5987_p9, %p6361_p13  ;;  %p5996_p12 = por %p5995_p6, %p5994_p2 }
  0x30   : > { %p5990_p1 = pneg %p5989_p10 }
  0x32   : > { %p5997_p0 = pnand %p5996_p12, %p5990_p1 }
  0x34   : > { %6000 = shalt.err (!%p5997_p0)
}
  0x35   : > { %s7091_s25 = smov 256   ;;  %s7093_s26 = smov 16  }
  0x36   : > { %5306 = dma.hbm_to_vmem [thread:$0]  (!%p6345_p11), %s7105_s2, 16384, %s6338_s19, [#allocation6], %s7091_s25, %s7091_s25, %s7093_s26  }
  0x37   : > { %s7107_s3 = sld [smem:[#allocation24_spill]] }
  0x3d   : > { %s6001_s21 = scalar_lea.hbm %s7107_s3, 16384 }
  0x3e   : > { %p6002_p1 = scmp.ne.s32.totalorder %s7107_s3, %s6001_s21  ;;  %p6008_p10 = scmp.lt.u32.totalorder %s6001_s21, %s7107_s3 }
  0x40   : > { %p6004_p2 = pnand %p6002_p1, %p6361_p13 }
  0x42   : > { %p6005_p6 = pneg %p6004_p2 }
  0x44   : > { %p6010_p3 = pnand %p6008_p10, %p6005_p6 }
  0x46   : > { %6013 = shalt.err (!%p6010_p3)
}
  0x47   : > { %s6014_s19 = scalar_lea.vmem %s6349_s22, 16384  ;;  %p6022_p12 = scmp.lt.s32.totalorder %s6349_s22, %s6349_s22 }
  0x48   : > { %p6015_p5 = scmp.ne.s32.totalorder %s6349_s22, %s6014_s19  ;;  %p6023_p0 = scmp.lt.s32.totalorder %s6014_s19, %s6014_s19 }
  0x4a   : > { %p6017_p7 = pnand %p6015_p5, %p6361_p13  ;;  %p6024_p1 = por %p6023_p0, %p6022_p12 }
  0x4c   : > { %p6018_p9 = pneg %p6017_p7 }
  0x4e   : > { %p6025_p2 = pnand %p6024_p1, %p6018_p9 }
  0x50   : > { %6028 = shalt.err (!%p6025_p2)
}
  0x51   : > { %5309 = dma.hbm_to_vmem [thread:$0]  (!%p6345_p11), %s7107_s3, 16384, %s6349_s22, [#allocation9], %s7091_s25, %s7091_s25, %s7093_s26  }
  0x52   : > { %s6029_s28 = scalar_lea.hbm %s7080_s5, 8192 }
  0x53   : > { %p6030_p6 = scmp.ne.s32.totalorder %s7080_s5, %s6029_s28  ;;  %p6036_p5 = scmp.lt.u32.totalorder %s6029_s28, %s7080_s5 }
  0x55   : > { %p6032_p10 = pnand %p6030_p6, %p6361_p13 }
  0x57   : > { %p6033_p3 = pneg %p6032_p10 }
  0x59   : > { %p6038_p7 = pnand %p6036_p5, %p6033_p3 }
  0x5b   : > { %6041 = shalt.err (!%p6038_p7)
}
  0x5c   : > { %s6042_s19 = scalar_lea.vmem %s302_s24, 8192  ;;  %p6050_p1 = scmp.lt.s32.totalorder %s302_s24, %s302_s24 }
  0x5d   : > { %p6043_p9 = scmp.ne.s32.totalorder %s302_s24, %s6042_s19  ;;  %p6051_p2 = scmp.lt.s32.totalorder %s6042_s19, %s6042_s19 }
  0x5f   : > { %p6045_p12 = pnand %p6043_p9, %p6361_p13  ;;  %p6052_p4 = por %p6051_p2, %p6050_p1 }
  0x61   : > { %p6046_p0 = pneg %p6045_p12 }
  0x63   : > { %p6053_p8 = pnand %p6052_p4, %p6046_p0 }
  0x65   : > { %6056 = shalt.err (!%p6053_p8)
}
  0x66   : > { %s6234_s22 = smov 128   ;;  %s6235_s9 = smov 8  }
  0x67   : > { %5312 = dma.hbm_to_vmem [thread:$0]  (!%p6345_p11), %s7080_s5, 8192, %s302_s24, [#allocation9], %s6234_s22, %s6234_s22, %s6235_s9  }
  0x68   : > { %s6236_s27 = smov [#allocation11]   ;;  %s6057_s21 = scalar_lea.hbm %s7082_s7, 2048 }
  0x69   : > { %s317_s28 = sshll.u32 %s6236_s27, 4  ;;  %p6058_p4 = scmp.ne.s32.totalorder %s7082_s7, %s6057_s21  ;;  %s318_s28 = int_to_ptr.vmem [resolvable:$true] %s317_s28 }
  0x6a   : > { %p6064_p10 = scmp.lt.u32.totalorder %s6057_s21, %s7082_s7 }
  0x6b   : > { %p6060_p8 = pnand %p6058_p4, %p6361_p13 }
  0x6d   : > { %p6061_p6 = pneg %p6060_p8 }
  0x6f   : > { %p6066_p3 = pnand %p6064_p10, %p6061_p6 }
  0x71   : > { %6069 = shalt.err (!%p6066_p3)
}
  0x72   : > { %s6070_s24 = scalar_lea.vmem %s318_s28, 2048  ;;  %p6078_p12 = scmp.lt.s32.totalorder %s318_s28, %s318_s28 }
  0x73   : > { %p6071_p5 = scmp.ne.s32.totalorder %s318_s28, %s6070_s24  ;;  %p6079_p0 = scmp.lt.s32.totalorder %s6070_s24, %s6070_s24 }
  0x75   : > { %p6073_p7 = pnand %p6071_p5, %p6361_p13  ;;  %p6080_p1 = por %p6079_p0, %p6078_p12 }
  0x77   : > { %p6074_p9 = pneg %p6073_p7 }
  0x79   : > { %p6081_p2 = pnand %p6080_p1, %p6074_p9 }
  0x7b   : > { %6084 = shalt.err (!%p6081_p2)
}
  0x7c   : > { %s6237_s22 = smov 64   ;;  %s6238_s14 = smov 4  }
  0x7d   : > { %5315 = dma.hbm_to_vmem [thread:$0]  (!%p6345_p11), %s7082_s7, 2048, %s318_s28, [#allocation12], %s6237_s22, %s6237_s22, %s6238_s14  }
  0x7e   : > { %s6449_s9 = sadd.s32 1, %s6227_s12   ;;  %s37_s16 = sadd.s32 1, %s6223_s11 }
  0x7f   : > { %s34_s30 = ssub.s32 %s6227_s12, %s6449_s9  ;;  %p44_p4 = scmp.ne.s32.totalorder %s6223_s11, %s6219_s10 }
  0x80   : > { %p35_p13 = scmp.eq.s32.totalorder %s34_s30, 0  ;;  %p45_p8 = scmp.eq.s32.totalorder %s6227_s12, 0 }
  0x81   : > { %p7108_p10 = scmp.eq.s32.totalorder %s6315_s13, 1  ;;  %p5331_p5 = scmp.lt.s32.totalorder %s6227_s12, 2 }
  0x82   : > { %s6458_s27 = scalar_select %p35_p13, %s6223_s11, %s37_s16  }
  0x83   : > { %p46_p6 = por %p45_p8, %p44_p4  ;;  %p6462_p3 = por %p7108_p10, %p44_p4 }
  0x84   : > { %s334_s20 = sand.u32 1, %s6223_s11   ;;  %s4925_s28 = sshll.u32 %s6227_s12, 12 }
  0x85   : > { %s4502_s18 = sshll.u32 %s334_s20, 8  ;;  %s7110_s0 = sld [smem:[#allocation22_spill]] }
  0x86   : > { %s338_s24 = scalar_lea.vmem [#allocation2], %s4502_s18  ;;  %p6476_p11 = pnand %p5331_p5, %p46_p6 }
  0x87   : > { %s346_s22 = sshll.u32 %s338_s24, 4  ;;  %s6483_s30 = scalar_lea.hbm %s7076_s1, %s4925_s28  ;;  %s6474_s22 = int_to_ptr.vmem [resolvable:$true] %s346_s22 }
  0x88   : > { %s360_s16 = scalar_lea.vmem [#allocation5], %s4502_s18  ;;  %s6487_s23 = scalar_lea.sflag [#allocation3], %s334_s20 }
  0x89   : > { %s6485_s21 = sshll.u32 %s360_s16, 4  ;;  %p6087_p9 = pneg %p6476_p11  ;;  %s6519_s21 = int_to_ptr.vmem [resolvable:$true] %s6485_s21 }
  0x8b   : > { %s6472_s19 = scalar_lea.hbm %s7110_s0, %s4925_s28  ;;  %s6090_s25 = scalar_lea.hbm %s7110_s0, 8192 }
  0x8c   : > { %s6085_s24 = scalar_lea.hbm %s6472_s19, 4096  ;;  %p6091_p1 = scmp.lt.u32.totalorder %s6472_s19, %s7110_s0 }
  0x8d   : > { %p6086_p7 = scmp.ne.s32.totalorder %s6472_s19, %s6085_s24  ;;  %p6092_p2 = scmp.lt.u32.totalorder %s6090_s25, %s6085_s24 }
  0x8e   : > { %p6094_p4 = scmp.lt.u32.totalorder %s6085_s24, %s6472_s19 }
  0x8f   : > { %p6088_p12 = pnand %p6087_p9, %p6086_p7  ;;  %p6093_p13 = por %p6092_p2, %p6091_p1 }
  0x91   : > { %p6089_p0 = pneg %p6088_p12  ;;  %p6095_p8 = por %p6094_p4, %p6093_p13 }
  0x93   : > { %p6096_p6 = pnand %p6095_p8, %p6089_p0 }
  0x95   : > { %6099 = shalt.err (!%p6096_p6)
}
  0x96   : > { %s6100_s20 = scalar_lea.vmem %s6474_s22, 4096  ;;  %s6239_s2 = smov [#allocation2]  }
  0x97   : > { %p6101_p10 = scmp.ne.s32.totalorder %s6474_s22, %s6100_s20  ;;  %s6105_s3 = sshll.u32 %s6239_s2, 4  ;;  %s6106_s3 = int_to_ptr.vmem [resolvable:$false] %s6105_s3 }
  0x98   : > { %s6107_s18 = scalar_lea.vmem %s6106_s3, 8192  ;;  %p6108_p12 = scmp.lt.s32.totalorder %s6474_s22, %s6106_s3 }
  0x99   : > { %p6103_p5 = pnand %p6101_p10, %p6087_p9  ;;  %p6109_p1 = scmp.lt.s32.totalorder %s6107_s18, %s6100_s20 }
  0x9b   : > { %p6104_p7 = pneg %p6103_p5  ;;  %p6110_p2 = por %p6109_p1, %p6108_p12 }
  0x9d   : > { %p6111_p13 = pnand %p6110_p2, %p6104_p7 }
  0x9f   : > { %6114 = shalt.err (!%p6111_p13)
}
  0xa0   : > { %s7112_s16 = smov 16   ;;  %s7113_s24 = smov 256  }
  0xa1   : > { %5319 = dma.hbm_to_vmem [thread:$0]  (!%p6476_p11), %s6472_s19, 4096, %s6474_s22, %s6487_s23, %s7113_s24, %s7113_s24, %s7112_s16  }
  0xa2   : > { %s356_s25 = sand.u32 1, %s6227_s12   ;;  %s6115_s28 = scalar_lea.hbm %s6483_s30, 4096 }
  0xa3   : > { %s6522_s26 = scalar_lea.sflag [#allocation6], %s356_s25  ;;  %p6116_p0 = scmp.ne.s32.totalorder %s6483_s30, %s6115_s28 }
  0xa4   : > { %s6120_s3 = scalar_lea.hbm %s7076_s1, 8192  ;;  %p6121_p6 = scmp.lt.u32.totalorder %s6483_s30, %s7076_s1 }
  0xa5   : > { %p6118_p4 = pnand %p6116_p0, %p6087_p9  ;;  %p6122_p10 = scmp.lt.u32.totalorder %s6120_s3, %s6115_s28 }
  0xa6   : > { %p6124_p7 = scmp.lt.u32.totalorder %s6115_s28, %s6483_s30 }
  0xa7   : > { %p6119_p8 = pneg %p6118_p4  ;;  %p6123_p5 = por %p6122_p10, %p6121_p6 }
  0xa9   : > { %p6125_p12 = por %p6124_p7, %p6123_p5 }
  0xab   : > { %p6126_p1 = pnand %p6125_p12, %p6119_p8 }
  0xad   : > { %6129 = shalt.err (!%p6126_p1)
}
  0xae   : > { %s6130_s19 = scalar_lea.vmem %s6519_s21, 4096  ;;  %s6240_s22 = smov [#allocation5]  }
  0xaf   : > { %p6131_p2 = scmp.ne.s32.totalorder %s6519_s21, %s6130_s19  ;;  %s6135_s23 = sshll.u32 %s6240_s22, 4  ;;  %s6136_s23 = int_to_ptr.vmem [resolvable:$false] %s6135_s23 }
  0xb0   : > { %s6137_s0 = scalar_lea.vmem %s6136_s23, 8192  ;;  %p6138_p4 = scmp.lt.s32.totalorder %s6519_s21, %s6136_s23 }
  0xb1   : > { %p6133_p13 = pnand %p6131_p2, %p6087_p9  ;;  %p6139_p6 = scmp.lt.s32.totalorder %s6137_s0, %s6130_s19 }
  0xb3   : > { %p6134_p0 = pneg %p6133_p13  ;;  %p6140_p10 = por %p6139_p6, %p6138_p4 }
  0xb5   : > { %p6141_p5 = pnand %p6140_p10, %p6134_p0 }
  0xb7   : > { %6144 = shalt.err (!%p6141_p5)
}
  0xb8   : > { %5322 = dma.hbm_to_vmem [thread:$0]  (!%p6476_p11), %s6483_s30, 4096, %s6519_s21, %s6522_s26, %s7113_s24, %s7113_s24, %s7112_s16  }
  0xb9   : > { %p7114_p9 = scmp.ne.s32.totalorder %s7103_s17, 0 }
  0xba   : > { %s6554_s25 = sand.u32 (!%p7114_p9), 1, %s6219_s10   ;;  %p7115_p8 = scmp.ne.s32.totalorder (!%p7114_p9), %s7100_s15, 0 }
  0xbb   : > { %380 = sbr.rel (%p7114_p9) target bundleno = 1261 (0x4ed), region = 56  ;;  %s4511_s28 = sshll.u32 (!%p7114_p9), %s6554_s25, 8 }
  0xbc   : > { %s383_s20 = scalar_lea.sflag (!%p7114_p9), [#allocation3], %s6554_s25  ;;  %s6558_s2 = scalar_lea.vmem (!%p7114_p9), [#allocation2], %s4511_s28 }
  0xc2   : > { %6190 = dma.done.wait (%p7115_p8), %s383_s20, 4096  }
  0xc3   : > { %6192 = vsyncadd (%p7115_p8), %s383_s20, 4294963200  ;;  %s391_s14 = sand.u32 1, %s6315_s13   ;;  %s6565_s30 = scalar_lea.vmem [#allocation5], %s4511_s28 }
  0xc4   : > { %s392_s17 = scalar_lea.sflag [#allocation6], %s391_s14 }
  0xc5   : > { %6194 = dma.done.wait (%p7115_p8), %s392_s17, 4096  }
  0xc6   : > { %6196 = vsyncadd (%p7115_p8), %s392_s17, 4294963200  ;;  %p7116_p11 = scmp.eq.s32.totalorder %s6315_s13, 0 }
  0xc8   : > { %6198 = dma.done.wait (%p7116_p11), [#allocation6], 16384   ;;  %p7117_p7 = pmov %p7116_p11 }
  0xca   : > { %6200 = vsyncadd (%p7117_p7), [#allocation6], 4294950912  ;;  %p7118_p12 = pmov %p7117_p7 }
  0xcb   : > { %p7119_p1 = pmov %p7117_p7 }
  0xcc   : > { %6202 = dma.done.wait (%p7118_p12), [#allocation9], 24576  }
  0xcd   : > { %6204 = vsyncadd (%p7119_p1), [#allocation9], 4294942720  ;;  %p7120_p2 = pmov %p7119_p1 }
  0xce   : > { %p7121_p13 = pmov %p7119_p1 }
  0xcf   : > { %6206 = dma.done.wait (%p7120_p2), [#allocation12], 2048  }
  0xd0   : > { %6208 = vsyncadd (%p7121_p13), [#allocation12], 4294965248  ;;  %v5381_v0 = vld [vmem:[#allocation8 + $0x4] ss:$16 sps:$4 sm:$0xff]   ;;  %v5383_v1 = vld [vmem:[#allocation8 + $0xc] ss:$16 sps:$4 sm:$0xff]  }
  0xd1   : > { %1575 = vmatprep.subr.bf16.mxu0 %v5381_v0  ;;  %v5385_v2 = vld [vmem:[#allocation8] ss:$16 sps:$4 sm:$0xff]   ;;  %v5386_v3 = vld [vmem:[#allocation8 + $0x8] ss:$16 sps:$4 sm:$0xff]   ;;  %1801 = vmatprep.subr.bf16.mxu1 %v5383_v1  ;;  %v5387_v4 = vld [vmem:[#allocation8 + $0x24] ss:$16 sps:$4 sm:$0xff]  }
  0xd2   : > { %1576 = vmatpush1.bf16.msra.mxu0 %v5385_v2  ;;  %1802 = vmatpush1.bf16.msra.mxu1 %v5386_v3  ;;  %v5389_v5 = vld [vmem:[#allocation8 + $0x2c] ss:$16 sps:$4 sm:$0xff]   ;;  %v5391_v6 = vld [vmem:[#allocation8 + $0x20] ss:$16 sps:$4 sm:$0xff]   ;;  %v5392_v7 = vld [vmem:[#allocation8 + $0x28] ss:$16 sps:$4 sm:$0xff]  }
  0xd3   : > { %1577 = vmatprep.subr.bf16.mxu0 %v5387_v4  ;;  %1803 = vmatprep.subr.bf16.mxu1 %v5389_v5  ;;  %v5393_v8 = vld [vmem:[#allocation8 + $0x44] ss:$16 sps:$4 sm:$0xff]   ;;  %v5395_v9 = vld [vmem:[#allocation8 + $0x4c] ss:$16 sps:$4 sm:$0xff]   ;;  %v5397_v10 = vld [vmem:[#allocation8 + $0x40] ss:$16 sps:$4 sm:$0xff]  }
  0xd4   : > { %v5398_v11 = vld [vmem:[#allocation8 + $0x48] ss:$16 sps:$4 sm:$0xff]   ;;  %v5399_v12 = vld [vmem:[#allocation8 + $0x64] ss:$16 sps:$4 sm:$0xff]   ;;  %v5401_v13 = vld [vmem:[#allocation8 + $0x6c] ss:$16 sps:$4 sm:$0xff]  }
  0xd5   : > { %v5403_v14 = vld [vmem:[#allocation8 + $0x60] ss:$16 sps:$4 sm:$0xff]   ;;  %v5404_v15 = vld [vmem:[#allocation8 + $0x68] ss:$16 sps:$4 sm:$0xff]   ;;  %v5405_v16 = vld [vmem:[#allocation8 + $0x84] ss:$16 sps:$4 sm:$0xff]  }
  0xd6   : > { %1578 = vmatpush1.bf16.msra.mxu0 %v5391_v6  ;;  %1804 = vmatpush1.bf16.msra.mxu1 %v5392_v7  ;;  %v5407_v17 = vld [vmem:[#allocation8 + $0x8c] ss:$16 sps:$4 sm:$0xff]   ;;  %v5409_v18 = vld [vmem:[#allocation8 + $0x80] ss:$16 sps:$4 sm:$0xff]   ;;  %v5410_v19 = vld [vmem:[#allocation8 + $0x88] ss:$16 sps:$4 sm:$0xff]  }
  0xd7   : > { %1579 = vmatprep.subr.bf16.mxu0 %v5393_v8  ;;  %1805 = vmatprep.subr.bf16.mxu1 %v5395_v9  ;;  %v5411_v20 = vld [vmem:[#allocation8 + $0xa4] ss:$16 sps:$4 sm:$0xff]   ;;  %v5413_v21 = vld [vmem:[#allocation8 + $0xac] ss:$16 sps:$4 sm:$0xff]   ;;  %v5415_v22 = vld [vmem:[#allocation8 + $0xa0] ss:$16 sps:$4 sm:$0xff]  }
  0xd8   : > { %v5416_v23 = vld [vmem:[#allocation8 + $0xa8] ss:$16 sps:$4 sm:$0xff]   ;;  %v5417_v24 = vld [vmem:[#allocation8 + $0xc4] ss:$16 sps:$4 sm:$0xff]   ;;  %v5419_v25 = vld [vmem:[#allocation8 + $0xcc] ss:$16 sps:$4 sm:$0xff]  }
  0xd9   : > { %v5421_v26 = vld [vmem:[#allocation8 + $0xc0] ss:$16 sps:$4 sm:$0xff]   ;;  %v5422_v27 = vld [vmem:[#allocation8 + $0xc8] ss:$16 sps:$4 sm:$0xff]   ;;  %v5423_v28 = vld [vmem:[#allocation8 + $0xe4] ss:$16 sps:$4 sm:$0xff]  }
  0xda   : > { %1580 = vmatpush1.bf16.msra.mxu0 %v5397_v10  ;;  %1806 = vmatpush1.bf16.msra.mxu1 %v5398_v11  ;;  %v5425_v29 = vld [vmem:[#allocation8 + $0xec] ss:$16 sps:$4 sm:$0xff]   ;;  %v5427_v30 = vld [vmem:[#allocation8 + $0xe0] ss:$16 sps:$4 sm:$0xff]   ;;  %v5428_v31 = vld [vmem:[#allocation8 + $0xe8] ss:$16 sps:$4 sm:$0xff]  }
  0xdb   : > { %1581 = vmatprep.subr.bf16.mxu0 %v5399_v12  ;;  %1807 = vmatprep.subr.bf16.mxu1 %v5401_v13  ;;  %v5429_v32 = vld [vmem:[#allocation8 + $0x104] ss:$16 sps:$4 sm:$0xff]   ;;  %v5431_v33 = vld [vmem:[#allocation8 + $0x10c] ss:$16 sps:$4 sm:$0xff]   ;;  %v5433_v34 = vld [vmem:[#allocation8 + $0x100] ss:$16 sps:$4 sm:$0xff]  }
  0xdc   : > { %v5434_v35 = vld [vmem:[#allocation8 + $0x108] ss:$16 sps:$4 sm:$0xff]   ;;  %v5435_v36 = vld [vmem:[#allocation8 + $0x124] ss:$16 sps:$4 sm:$0xff]   ;;  %v5437_v37 = vld [vmem:[#allocation8 + $0x12c] ss:$16 sps:$4 sm:$0xff]  }
  0xdd   : > { %v5439_v38 = vld [vmem:[#allocation8 + $0x120] ss:$16 sps:$4 sm:$0xff]   ;;  %v5440_v39 = vld [vmem:[#allocation8 + $0x128] ss:$16 sps:$4 sm:$0xff]   ;;  %v5441_v40 = vld [vmem:[#allocation8 + $0x144] ss:$16 sps:$4 sm:$0xff]  }
  0xde   : > { %1582 = vmatpush1.bf16.msra.mxu0 %v5403_v14  ;;  %1808 = vmatpush1.bf16.msra.mxu1 %v5404_v15  ;;  %v5443_v41 = vld [vmem:[#allocation8 + $0x14c] ss:$16 sps:$4 sm:$0xff]   ;;  %v5445_v42 = vld [vmem:[#allocation8 + $0x140] ss:$16 sps:$4 sm:$0xff]   ;;  %v5446_v43 = vld [vmem:[#allocation8 + $0x148] ss:$16 sps:$4 sm:$0xff]  }
  0xdf   : > { %1583 = vmatprep.subr.bf16.mxu0 %v5405_v16  ;;  %1809 = vmatprep.subr.bf16.mxu1 %v5407_v17  ;;  %v5447_v44 = vld [vmem:[#allocation8 + $0x164] ss:$16 sps:$4 sm:$0xff]   ;;  %v5449_v45 = vld [vmem:[#allocation8 + $0x16c] ss:$16 sps:$4 sm:$0xff]   ;;  %v5451_v46 = vld [vmem:[#allocation8 + $0x160] ss:$16 sps:$4 sm:$0xff]  }
  0xe0   : > { %v5452_v47 = vld [vmem:[#allocation8 + $0x168] ss:$16 sps:$4 sm:$0xff]   ;;  %v5479_v48 = vld [vmem:[%s6565_s30 + $0x4] ss:$16 sps:$4 sm:$0xff]   ;;  %v5455_v50 = vld [vmem:[#allocation8 + $0x18c] ss:$16 sps:$4 sm:$0xff]  }
  0xe1   : > { %v5453_v49 = vld [vmem:[#allocation8 + $0x184] ss:$16 sps:$4 sm:$0xff]   ;;  %1607 = vmatprep.mubr.bf16.mxu0 %v5479_v48  ;;  %1833 = vmatprep.mubr.bf16.mxu1 %v5479_v48  ;;  %v5457_v51 = vld [vmem:[#allocation8 + $0x180] ss:$16 sps:$4 sm:$0xff]   ;;  %v5458_v52 = vld [vmem:[#allocation8 + $0x188] ss:$16 sps:$4 sm:$0xff]  }
  0xe2   : > { %1584 = vmatpush1.bf16.msra.mxu0 %v5409_v18  ;;  %1810 = vmatpush1.bf16.msra.mxu1 %v5410_v19  ;;  %v5459_v53 = vld [vmem:[#allocation8 + $0x1a4] ss:$16 sps:$4 sm:$0xff]   ;;  %v5461_v54 = vld [vmem:[#allocation8 + $0x1ac] ss:$16 sps:$4 sm:$0xff]   ;;  %v5463_v55 = vld [vmem:[#allocation8 + $0x1a0] ss:$16 sps:$4 sm:$0xff]  }
  0xe3   : > { %1585 = vmatprep.subr.bf16.mxu0 %v5411_v20  ;;  %1811 = vmatprep.subr.bf16.mxu1 %v5413_v21  ;;  %v5464_v56 = vld [vmem:[#allocation8 + $0x1a8] ss:$16 sps:$4 sm:$0xff]   ;;  %v5465_v57 = vld [vmem:[#allocation8 + $0x1c4] ss:$16 sps:$4 sm:$0xff]   ;;  %v5467_v58 = vld [vmem:[#allocation8 + $0x1cc] ss:$16 sps:$4 sm:$0xff]  }
  0xe4   : > { %v5469_v59 = vld [vmem:[#allocation8 + $0x1c0] ss:$16 sps:$4 sm:$0xff]   ;;  %v5470_v60 = vld [vmem:[#allocation8 + $0x1c8] ss:$16 sps:$4 sm:$0xff]   ;;  %v5471_v61 = vld [vmem:[#allocation8 + $0x1e4] ss:$16 sps:$4 sm:$0xff]  }
  0xe5   : > { %v5473_v62 = vld [vmem:[#allocation8 + $0x1ec] ss:$16 sps:$4 sm:$0xff]   ;;  %v5475_v63 = vld [vmem:[#allocation8 + $0x1e0] ss:$16 sps:$4 sm:$0xff]   ;;  %v5476_v0 = vld [vmem:[#allocation8 + $0x1e8] ss:$16 sps:$4 sm:$0xff]  }
  0xe6   : > { %1586 = vmatpush1.bf16.msra.mxu0 %v5415_v22  ;;  %1812 = vmatpush1.bf16.msra.mxu1 %v5416_v23  ;;  %v5482_v1 = vld [vmem:[#allocation8 + $0x204] ss:$16 sps:$4 sm:$0xff]   ;;  %v5485_v2 = vld [vmem:[#allocation8 + $0x20c] ss:$16 sps:$4 sm:$0xff]   ;;  %v5477_v3 = vld [vmem:[%s6565_s30] ss:$16 sps:$4 sm:$0xff]  }
  0xe7   : > { %1587 = vmatprep.subr.bf16.mxu0 %v5417_v24  ;;  %1813 = vmatprep.subr.bf16.mxu1 %v5419_v25  ;;  %v5480_v4 = vld [vmem:[#allocation8 + $0x200] ss:$16 sps:$4 sm:$0xff]   ;;  %v5483_v5 = vld [vmem:[#allocation8 + $0x208] ss:$16 sps:$4 sm:$0xff]   ;;  %v5488_v6 = vld [vmem:[#allocation8 + $0x224] ss:$16 sps:$4 sm:$0xff]  }
  0xe8   : > { %v5491_v7 = vld [vmem:[#allocation8 + $0x22c] ss:$16 sps:$4 sm:$0xff]   ;;  %v5492_v8 = vld [vmem:[%s6565_s30 + $0x24] ss:$16 sps:$4 sm:$0xff]   ;;  %v5486_v9 = vld [vmem:[#allocation8 + $0x220] ss:$16 sps:$4 sm:$0xff]  }
  0xe9   : > { %v5489_v10 = vld [vmem:[#allocation8 + $0x228] ss:$16 sps:$4 sm:$0xff]   ;;  %v5497_v11 = vld [vmem:[#allocation8 + $0x244] ss:$16 sps:$4 sm:$0xff]   ;;  %v5500_v12 = vld [vmem:[#allocation8 + $0x24c] ss:$16 sps:$4 sm:$0xff]  }
  0xea   : > { %1588 = vmatpush1.bf16.msra.mxu0 %v5421_v26  ;;  %1814 = vmatpush1.bf16.msra.mxu1 %v5422_v27  ;;  %v5494_v13 = vld [vmem:[%s6565_s30 + $0x20] ss:$16 sps:$4 sm:$0xff]   ;;  %v5498_v15 = vld [vmem:[#allocation8 + $0x248] ss:$16 sps:$4 sm:$0xff]   ;;  %v5503_v16 = vld [vmem:[#allocation8 + $0x264] ss:$16 sps:$4 sm:$0xff]  }
  0xeb   : > { %1589 = vmatprep.subr.bf16.mxu0 %v5423_v28  ;;  %1815 = vmatprep.subr.bf16.mxu1 %v5425_v29  ;;  %v5495_v14 = vld [vmem:[#allocation8 + $0x240] ss:$16 sps:$4 sm:$0xff]   ;;  %v5506_v17 = vld [vmem:[#allocation8 + $0x26c] ss:$16 sps:$4 sm:$0xff]   ;;  %v5507_v18 = vld [vmem:[%s6565_s30 + $0x44] ss:$16 sps:$4 sm:$0xff]  }
  0xec   : > { %v5501_v19 = vld [vmem:[#allocation8 + $0x260] ss:$16 sps:$4 sm:$0xff]   ;;  %v5504_v20 = vld [vmem:[#allocation8 + $0x268] ss:$16 sps:$4 sm:$0xff]   ;;  %v5512_v21 = vld [vmem:[#allocation8 + $0x284] ss:$16 sps:$4 sm:$0xff]  }
  0xed   : > { %v5515_v22 = vld [vmem:[#allocation8 + $0x28c] ss:$16 sps:$4 sm:$0xff]   ;;  %v5509_v23 = vld [vmem:[%s6565_s30 + $0x40] ss:$16 sps:$4 sm:$0xff]   ;;  %v5513_v25 = vld [vmem:[#allocation8 + $0x288] ss:$16 sps:$4 sm:$0xff]  }
  0xee   : > { %1590 = vmatpush1.bf16.msra.mxu0 %v5427_v30  ;;  %1816 = vmatpush1.bf16.msra.mxu1 %v5428_v31  ;;  %v5510_v24 = vld [vmem:[#allocation8 + $0x280] ss:$16 sps:$4 sm:$0xff]   ;;  %v5518_v26 = vld [vmem:[#allocation8 + $0x2a4] ss:$16 sps:$4 sm:$0xff]   ;;  %v5521_v27 = vld [vmem:[#allocation8 + $0x2ac] ss:$16 sps:$4 sm:$0xff]  }
  0xef   : > { %1591 = vmatprep.subr.bf16.mxu0 %v5429_v32  ;;  %1817 = vmatprep.subr.bf16.mxu1 %v5431_v33  ;;  %v5522_v28 = vld [vmem:[%s6565_s30 + $0x64] ss:$16 sps:$4 sm:$0xff]   ;;  %v5516_v29 = vld [vmem:[#allocation8 + $0x2a0] ss:$16 sps:$4 sm:$0xff]   ;;  %v5519_v30 = vld [vmem:[#allocation8 + $0x2a8] ss:$16 sps:$4 sm:$0xff]  }
  0xf0   : > { %v5527_v31 = vld [vmem:[#allocation8 + $0x2c4] ss:$16 sps:$4 sm:$0xff]   ;;  %v5530_v32 = vld [vmem:[#allocation8 + $0x2cc] ss:$16 sps:$4 sm:$0xff]   ;;  %v5524_v33 = vld [vmem:[%s6565_s30 + $0x60] ss:$16 sps:$4 sm:$0xff]  }
  0xf1   : > { %v5552_v48 = vld [vmem:[%s6565_s30 + $0xa4] ss:$16 sps:$4 sm:$0xff]   ;;  %s4517_s26 = sshll.u32 %s6554_s25, 7  ;;  %s4928_s22 = sshll.u32 %s6315_s13, 11 }
  0xf2   : > { %1592 = vmatpush1.bf16.msra.mxu0 %v5433_v34  ;;  %1818 = vmatpush1.bf16.msra.mxu1 %v5434_v35  ;;  %v5525_v34 = vld [vmem:[#allocation8 + $0x2c0] ss:$16 sps:$4 sm:$0xff]   ;;  %v5528_v35 = vld [vmem:[#allocation8 + $0x2c8] ss:$16 sps:$4 sm:$0xff]   ;;  %s6991_s19 = scalar_lea.vmem [#allocation13], %s4517_s26  ;;  %s7122_s20 = sld [smem:[#allocation25_spill]] }
  0xf3   : > { %1593 = vmatprep.subr.bf16.mxu0 %v5435_v36  ;;  %1819 = vmatprep.subr.bf16.mxu1 %v5437_v37  ;;  %v5533_v36 = vld [vmem:[#allocation8 + $0x2e4] ss:$16 sps:$4 sm:$0xff]   ;;  %v5536_v37 = vld [vmem:[#allocation8 + $0x2ec] ss:$16 sps:$4 sm:$0xff]   ;;  %s4361_s23 = sshll.u32 %s6991_s19, 4  ;;  %s4348_s13 = scalar_lea.sflag [#allocation4], %s6554_s25  ;;  %s7028_s23 = int_to_ptr.vmem [resolvable:$true] %s4361_s23 }
  0xf4   : > { %s6145_s14 = scalar_lea.vmem %s7028_s23, 2048  ;;  %s6241_s17 = smov [#allocation13]  }
  0xf5   : > { %p6146_p0 = scmp.ne.s32.totalorder %s7028_s23, %s6145_s14 }
  0xf6   : > { %1594 = vmatpush1.bf16.msra.mxu0 %v5439_v38  ;;  %1820 = vmatpush1.bf16.msra.mxu1 %v5440_v39  ;;  %v5537_v38 = vld [vmem:[%s6565_s30 + $0x84] ss:$16 sps:$4 sm:$0xff]   ;;  %v5531_v39 = vld [vmem:[#allocation8 + $0x2e0] ss:$16 sps:$4 sm:$0xff]  }
  0xf7   : > { %1595 = vmatprep.subr.bf16.mxu0 %v5441_v40  ;;  %1821 = vmatprep.subr.bf16.mxu1 %v5443_v41  ;;  %v5534_v40 = vld [vmem:[#allocation8 + $0x2e8] ss:$16 sps:$4 sm:$0xff]   ;;  %v5542_v41 = vld [vmem:[#allocation8 + $0x304] ss:$16 sps:$4 sm:$0xff]   ;;  %p6147_p4 = pnand %p6146_p0, %p6462_p3 }
  0xf9   : > { %p6148_p6 = pneg %p6147_p4 }
  0xfa   : > { %1596 = vmatpush1.bf16.msra.mxu0 %v5445_v42  ;;  %1822 = vmatpush1.bf16.msra.mxu1 %v5446_v43  ;;  %v5545_v42 = vld [vmem:[#allocation8 + $0x30c] ss:$16 sps:$4 sm:$0xff]   ;;  %v5539_v43 = vld [vmem:[%s6565_s30 + $0x80] ss:$16 sps:$4 sm:$0xff]  }
  0xfb   : > { %1597 = vmatprep.subr.bf16.mxu0 %v5447_v44  ;;  %1823 = vmatprep.subr.bf16.mxu1 %v5449_v45  ;;  %v5540_v44 = vld [vmem:[#allocation8 + $0x300] ss:$16 sps:$4 sm:$0xff]   ;;  %v5543_v45 = vld [vmem:[#allocation8 + $0x308] ss:$16 sps:$4 sm:$0xff]  }
  0xfe   : > { %1598 = vmatpush1.bf16.msra.mxu0 %v5451_v46  ;;  %1824 = vmatpush1.bf16.msra.mxu1 %v5452_v47  ;;  %v5548_v46 = vld [vmem:[#allocation8 + $0x324] ss:$16 sps:$4 sm:$0xff]   ;;  %v5551_v47 = vld [vmem:[#allocation8 + $0x32c] ss:$16 sps:$4 sm:$0xff]  }
  0xff   : > { %1599 = vmatprep.subr.bf16.mxu0 %v5453_v49  ;;  %1825 = vmatprep.subr.bf16.mxu1 %v5455_v50  ;;  %v5546_v49 = vld [vmem:[#allocation8 + $0x320] ss:$16 sps:$4 sm:$0xff]   ;;  %v5549_v50 = vld [vmem:[#allocation8 + $0x328] ss:$16 sps:$4 sm:$0xff]  }
 0x102   : > { %1600 = vmatpush1.bf16.msra.mxu0 %v5457_v51  ;;  %1826 = vmatpush1.bf16.msra.mxu1 %v5458_v52  ;;  %v5557_v51 = vld [vmem:[#allocation8 + $0x344] ss:$16 sps:$4 sm:$0xff]   ;;  %v5560_v52 = vld [vmem:[#allocation8 + $0x34c] ss:$16 sps:$4 sm:$0xff]  }
 0x103   : > { %1601 = vmatprep.subr.bf16.mxu0 %v5459_v53  ;;  %1827 = vmatprep.subr.bf16.mxu1 %v5461_v54  ;;  %v5554_v53 = vld [vmem:[%s6565_s30 + $0xa0] ss:$16 sps:$4 sm:$0xff]  }
 0x104   : > { %v5555_v54 = vld [vmem:[#allocation8 + $0x340] ss:$16 sps:$4 sm:$0xff]  }
 0x106   : > { %1602 = vmatpush1.bf16.msra.mxu0 %v5463_v55  ;;  %1828 = vmatpush1.bf16.msra.mxu1 %v5464_v56  ;;  %v5558_v55 = vld [vmem:[#allocation8 + $0x348] ss:$16 sps:$4 sm:$0xff]   ;;  %v5563_v56 = vld [vmem:[#allocation8 + $0x364] ss:$16 sps:$4 sm:$0xff]  }
 0x107   : > { %1603 = vmatprep.subr.bf16.mxu0 %v5465_v57  ;;  %1829 = vmatprep.subr.bf16.mxu1 %v5467_v58  ;;  %v5566_v57 = vld [vmem:[#allocation8 + $0x36c] ss:$16 sps:$4 sm:$0xff]   ;;  %v5567_v58 = vld [vmem:[%s6565_s30 + $0xc4] ss:$16 sps:$4 sm:$0xff]  }
 0x10a   : > { %1604 = vmatpush1.bf16.msra.mxu0 %v5469_v59  ;;  %1830 = vmatpush1.bf16.msra.mxu1 %v5470_v60  ;;  %v5561_v59 = vld [vmem:[#allocation8 + $0x360] ss:$16 sps:$4 sm:$0xff]   ;;  %v5564_v60 = vld [vmem:[#allocation8 + $0x368] ss:$16 sps:$4 sm:$0xff]  }
 0x10b   : > { %1605 = vmatprep.subr.bf16.mxu0 %v5471_v61  ;;  %1831 = vmatprep.subr.bf16.mxu1 %v5473_v62  ;;  %v5572_v61 = vld [vmem:[#allocation8 + $0x384] ss:$16 sps:$4 sm:$0xff]   ;;  %v5575_v62 = vld [vmem:[#allocation8 + $0x38c] ss:$16 sps:$4 sm:$0xff]  }
 0x10e   : > { %1606 = vmatpush1.bf16.msra.mxu0 %v5475_v63  ;;  %1832 = vmatpush1.bf16.msra.mxu1 %v5476_v0  ;;  %v5569_v63 = vld [vmem:[%s6565_s30 + $0xc0] ss:$16 sps:$4 sm:$0xff]  }
 0x10f   : > { %1688 = vmatprep.subr.bf16.mxu0 %v5482_v1  ;;  %1914 = vmatprep.subr.bf16.mxu1 %v5485_v2  ;;  %v5570_v0 = vld [vmem:[#allocation8 + $0x380] ss:$16 sps:$4 sm:$0xff]   ;;  %v5573_v1 = vld [vmem:[#allocation8 + $0x388] ss:$16 sps:$4 sm:$0xff]   ;;  %v5578_v2 = vld [vmem:[#allocation8 + $0x3a4] ss:$16 sps:$4 sm:$0xff]  }
 0x111   : > { %1608 = vmatmul.mubr.bf16.vlgmr.msra.gmra.mrb[0].mxu0 %v5477_v3  ;;  %1834 = vmatmul.mubr.bf16.vlgmr.msra.gmra.mrb[0].mxu1 %v5477_v3  ;;  %v5581_v3 = vld [vmem:[#allocation8 + $0x3ac] ss:$16 sps:$4 sm:$0xff]  }
 0x112   : > { %1689 = vmatpush1.bf16.msra.mxu0 %v5480_v4  ;;  %1915 = vmatpush1.bf16.msra.mxu1 %v5483_v5  ;;  %v5582_v4 = vld [vmem:[%s6565_s30 + $0xe4] ss:$16 sps:$4 sm:$0xff]   ;;  %v5576_v5 = vld [vmem:[#allocation8 + $0x3a0] ss:$16 sps:$4 sm:$0xff]  }
 0x113   : > { %1690 = vmatprep.subr.bf16.mxu0 %v5488_v6  ;;  %1916 = vmatprep.subr.bf16.mxu1 %v5491_v7  ;;  %v5579_v6 = vld [vmem:[#allocation8 + $0x3a8] ss:$16 sps:$4 sm:$0xff]   ;;  %v5587_v7 = vld [vmem:[#allocation8 + $0x3c4] ss:$16 sps:$4 sm:$0xff]  }
 0x114   : > { %1617 = vmatprep.mubr.bf16.mxu0 %v5492_v8  ;;  %1843 = vmatprep.mubr.bf16.mxu1 %v5492_v8  ;;  %v5590_v8 = vld [vmem:[#allocation8 + $0x3cc] ss:$16 sps:$4 sm:$0xff]  }
 0x116   : > { %1691 = vmatpush1.bf16.msra.mxu0 %v5486_v9  ;;  %1917 = vmatpush1.bf16.msra.mxu1 %v5489_v10  ;;  %v5584_v9 = vld [vmem:[%s6565_s30 + $0xe0] ss:$16 sps:$4 sm:$0xff]  }
 0x117   : > { %1692 = vmatprep.subr.bf16.mxu0 %v5497_v11  ;;  %1918 = vmatprep.subr.bf16.mxu1 %v5500_v12  ;;  %v5585_v10 = vld [vmem:[#allocation8 + $0x3c0] ss:$16 sps:$4 sm:$0xff]   ;;  %v5588_v11 = vld [vmem:[#allocation8 + $0x3c8] ss:$16 sps:$4 sm:$0xff]   ;;  %v5593_v12 = vld [vmem:[#allocation8 + $0x3e4] ss:$16 sps:$4 sm:$0xff]  }
 0x119   : > { %1618 = vmatmul.mubr.bf16.gmra.mrb[4].mxu0 %v5494_v13  ;;  %1844 = vmatmul.mubr.bf16.gmra.mrb[4].mxu1 %v5494_v13  ;;  %v5596_v13 = vld [vmem:[#allocation8 + $0x3ec] ss:$16 sps:$4 sm:$0xff]  }
 0x11a   : > { %1693 = vmatpush1.bf16.msra.mxu0 %v5495_v14  ;;  %1919 = vmatpush1.bf16.msra.mxu1 %v5498_v15  ;;  %v5599_v14 = vld [vmem:[%s6565_s30 + $0xc] ss:$16 sps:$4 sm:$0xff]   ;;  %v5591_v15 = vld [vmem:[#allocation8 + $0x3e0] ss:$16 sps:$4 sm:$0xff]  }
 0x11b   : > { %1694 = vmatprep.subr.bf16.mxu0 %v5503_v16  ;;  %1920 = vmatprep.subr.bf16.mxu1 %v5506_v17  ;;  %v5594_v16 = vld [vmem:[#allocation8 + $0x3e8] ss:$16 sps:$4 sm:$0xff]   ;;  %v5602_v17 = vld [vmem:[#allocation7 + $0x4] ss:$16 sps:$4 sm:$0xff]  }
 0x11c   : > { %1627 = vmatprep.mubr.bf16.mxu0 %v5507_v18  ;;  %1853 = vmatprep.mubr.bf16.mxu1 %v5507_v18  ;;  %v5605_v18 = vld [vmem:[#allocation7 + $0xc] ss:$16 sps:$4 sm:$0xff]  }
 0x11e   : > { %1695 = vmatpush1.bf16.msra.mxu0 %v5501_v19  ;;  %1921 = vmatpush1.bf16.msra.mxu1 %v5504_v20  ;;  %v5597_v19 = vld [vmem:[%s6565_s30 + $0x8] ss:$16 sps:$4 sm:$0xff]   ;;  %v5600_v20 = vld [vmem:[#allocation7] ss:$16 sps:$4 sm:$0xff]  }
 0x11f   : > { %1696 = vmatprep.subr.bf16.mxu0 %v5512_v21  ;;  %1922 = vmatprep.subr.bf16.mxu1 %v5515_v22  ;;  %v5603_v21 = vld [vmem:[#allocation7 + $0x8] ss:$16 sps:$4 sm:$0xff]   ;;  %v5608_v22 = vld [vmem:[#allocation7 + $0x24] ss:$16 sps:$4 sm:$0xff]  }
 0x121   : > { %1628 = vmatmul.mubr.bf16.gmra.mrb[8].mxu0 %v5509_v23  ;;  %1854 = vmatmul.mubr.bf16.gmra.mrb[8].mxu1 %v5509_v23  ;;  %v5611_v23 = vld [vmem:[#allocation7 + $0x2c] ss:$16 sps:$4 sm:$0xff]  }
 0x122   : > { %1697 = vmatpush1.bf16.msra.mxu0 %v5510_v24  ;;  %1923 = vmatpush1.bf16.msra.mxu1 %v5513_v25  ;;  %v5612_v24 = vld [vmem:[%s6565_s30 + $0x2c] ss:$16 sps:$4 sm:$0xff]   ;;  %v5606_v25 = vld [vmem:[#allocation7 + $0x20] ss:$16 sps:$4 sm:$0xff]  }
 0x123   : > { %1698 = vmatprep.subr.bf16.mxu0 %v5518_v26  ;;  %1924 = vmatprep.subr.bf16.mxu1 %v5521_v27  ;;  %v5609_v26 = vld [vmem:[#allocation7 + $0x28] ss:$16 sps:$4 sm:$0xff]   ;;  %v5617_v27 = vld [vmem:[#allocation7 + $0x44] ss:$16 sps:$4 sm:$0xff]  }
 0x124   : > { %1637 = vmatprep.mubr.bf16.mxu0 %v5522_v28  ;;  %1863 = vmatprep.mubr.bf16.mxu1 %v5522_v28  ;;  %v5620_v28 = vld [vmem:[#allocation7 + $0x4c] ss:$16 sps:$4 sm:$0xff]  }
 0x126   : > { %1699 = vmatpush1.bf16.msra.mxu0 %v5516_v29  ;;  %1925 = vmatpush1.bf16.msra.mxu1 %v5519_v30  ;;  %v5614_v29 = vld [vmem:[%s6565_s30 + $0x28] ss:$16 sps:$4 sm:$0xff]   ;;  %v5615_v30 = vld [vmem:[#allocation7 + $0x40] ss:$16 sps:$4 sm:$0xff]  }
 0x127   : > { %1700 = vmatprep.subr.bf16.mxu0 %v5527_v31  ;;  %1926 = vmatprep.subr.bf16.mxu1 %v5530_v32  ;;  %v5618_v31 = vld [vmem:[#allocation7 + $0x48] ss:$16 sps:$4 sm:$0xff]   ;;  %v5623_v32 = vld [vmem:[#allocation7 + $0x64] ss:$16 sps:$4 sm:$0xff]  }
 0x129   : > { %1638 = vmatmul.mubr.bf16.gmra.mrb[12].mxu0 %v5524_v33  ;;  %1864 = vmatmul.mubr.bf16.gmra.mrb[12].mxu1 %v5524_v33  ;;  %v5626_v33 = vld [vmem:[#allocation7 + $0x6c] ss:$16 sps:$4 sm:$0xff]  }
 0x12a   : > { %1701 = vmatpush1.bf16.msra.mxu0 %v5525_v34  ;;  %1927 = vmatpush1.bf16.msra.mxu1 %v5528_v35  ;;  %v5627_v34 = vld [vmem:[%s6565_s30 + $0x4c] ss:$16 sps:$4 sm:$0xff]   ;;  %v5621_v35 = vld [vmem:[#allocation7 + $0x60] ss:$16 sps:$4 sm:$0xff]  }
 0x12b   : > { %1702 = vmatprep.subr.bf16.mxu0 %v5533_v36  ;;  %1928 = vmatprep.subr.bf16.mxu1 %v5536_v37  ;;  %v5624_v36 = vld [vmem:[#allocation7 + $0x68] ss:$16 sps:$4 sm:$0xff]   ;;  %v5632_v37 = vld [vmem:[#allocation7 + $0x84] ss:$16 sps:$4 sm:$0xff]  }
 0x12c   : > { %1647 = vmatprep.mubr.bf16.mxu0 %v5537_v38  ;;  %1873 = vmatprep.mubr.bf16.mxu1 %v5537_v38  ;;  %v5635_v38 = vld [vmem:[#allocation7 + $0x8c] ss:$16 sps:$4 sm:$0xff]  }
 0x12e   : > { %1703 = vmatpush1.bf16.msra.mxu0 %v5531_v39  ;;  %1929 = vmatpush1.bf16.msra.mxu1 %v5534_v40  ;;  %v5629_v39 = vld [vmem:[%s6565_s30 + $0x48] ss:$16 sps:$4 sm:$0xff]   ;;  %v5630_v40 = vld [vmem:[#allocation7 + $0x80] ss:$16 sps:$4 sm:$0xff]  }
 0x12f   : > { %1704 = vmatprep.subr.bf16.mxu0 %v5542_v41  ;;  %1930 = vmatprep.subr.bf16.mxu1 %v5545_v42  ;;  %v5633_v41 = vld [vmem:[#allocation7 + $0x88] ss:$16 sps:$4 sm:$0xff]   ;;  %v5638_v42 = vld [vmem:[#allocation7 + $0xa4] ss:$16 sps:$4 sm:$0xff]  }
 0x131   : > { %1648 = vmatmul.mubr.bf16.gmra.mrb[16].mxu0 %v5539_v43  ;;  %1874 = vmatmul.mubr.bf16.gmra.mrb[16].mxu1 %v5539_v43  ;;  %v5641_v43 = vld [vmem:[#allocation7 + $0xac] ss:$16 sps:$4 sm:$0xff]  }
 0x132   : > { %1705 = vmatpush1.bf16.msra.mxu0 %v5540_v44  ;;  %1931 = vmatpush1.bf16.msra.mxu1 %v5543_v45  ;;  %v5642_v44 = vld [vmem:[%s6565_s30 + $0x6c] ss:$16 sps:$4 sm:$0xff]   ;;  %v5636_v45 = vld [vmem:[#allocation7 + $0xa0] ss:$16 sps:$4 sm:$0xff]  }
 0x133   : > { %1706 = vmatprep.subr.bf16.mxu0 %v5548_v46  ;;  %1932 = vmatprep.subr.bf16.mxu1 %v5551_v47  ;;  %v5639_v46 = vld [vmem:[#allocation7 + $0xa8] ss:$16 sps:$4 sm:$0xff]   ;;  %v5647_v47 = vld [vmem:[#allocation7 + $0xc4] ss:$16 sps:$4 sm:$0xff]  }
 0x134   : > { %1657 = vmatprep.mubr.bf16.mxu0 %v5552_v48  ;;  %1883 = vmatprep.mubr.bf16.mxu1 %v5552_v48  ;;  %v5650_v48 = vld [vmem:[#allocation7 + $0xcc] ss:$16 sps:$4 sm:$0xff]  }
 0x136   : > { %1707 = vmatpush1.bf16.msra.mxu0 %v5546_v49  ;;  %1933 = vmatpush1.bf16.msra.mxu1 %v5549_v50  ;;  %v5644_v49 = vld [vmem:[%s6565_s30 + $0x68] ss:$16 sps:$4 sm:$0xff]   ;;  %v5645_v50 = vld [vmem:[#allocation7 + $0xc0] ss:$16 sps:$4 sm:$0xff]  }
 0x137   : > { %1708 = vmatprep.subr.bf16.mxu0 %v5557_v51  ;;  %1934 = vmatprep.subr.bf16.mxu1 %v5560_v52  ;;  %v5648_v51 = vld [vmem:[#allocation7 + $0xc8] ss:$16 sps:$4 sm:$0xff]   ;;  %v5653_v52 = vld [vmem:[#allocation7 + $0xe4] ss:$16 sps:$4 sm:$0xff]  }
 0x139   : > { %1658 = vmatmul.mubr.bf16.gmra.mrb[20].mxu0 %v5554_v53  ;;  %1884 = vmatmul.mubr.bf16.gmra.mrb[20].mxu1 %v5554_v53  ;;  %v5656_v53 = vld [vmem:[#allocation7 + $0xec] ss:$16 sps:$4 sm:$0xff]  }
 0x13a   : > { %1709 = vmatpush1.bf16.msra.mxu0 %v5555_v54  ;;  %1935 = vmatpush1.bf16.msra.mxu1 %v5558_v55  ;;  %v5657_v54 = vld [vmem:[%s6565_s30 + $0x8c] ss:$16 sps:$4 sm:$0xff]   ;;  %v5651_v55 = vld [vmem:[#allocation7 + $0xe0] ss:$16 sps:$4 sm:$0xff]  }
 0x13b   : > { %1710 = vmatprep.subr.bf16.mxu0 %v5563_v56  ;;  %1936 = vmatprep.subr.bf16.mxu1 %v5566_v57  ;;  %v5654_v56 = vld [vmem:[#allocation7 + $0xe8] ss:$16 sps:$4 sm:$0xff]   ;;  %v5662_v57 = vld [vmem:[#allocation7 + $0x104] ss:$16 sps:$4 sm:$0xff]  }
 0x13c   : > { %1667 = vmatprep.mubr.bf16.mxu0 %v5567_v58  ;;  %1893 = vmatprep.mubr.bf16.mxu1 %v5567_v58  ;;  %v5665_v58 = vld [vmem:[#allocation7 + $0x10c] ss:$16 sps:$4 sm:$0xff]  }
 0x13e   : > { %1711 = vmatpush1.bf16.msra.mxu0 %v5561_v59  ;;  %1937 = vmatpush1.bf16.msra.mxu1 %v5564_v60  ;;  %v5659_v59 = vld [vmem:[%s6565_s30 + $0x88] ss:$16 sps:$4 sm:$0xff]   ;;  %v5660_v60 = vld [vmem:[#allocation7 + $0x100] ss:$16 sps:$4 sm:$0xff]  }
 0x13f   : > { %1712 = vmatprep.subr.bf16.mxu0 %v5572_v61  ;;  %1938 = vmatprep.subr.bf16.mxu1 %v5575_v62  ;;  %v5663_v61 = vld [vmem:[#allocation7 + $0x108] ss:$16 sps:$4 sm:$0xff]   ;;  %v5668_v62 = vld [vmem:[#allocation7 + $0x124] ss:$16 sps:$4 sm:$0xff]  }
 0x141   : > { %1668 = vmatmul.mubr.bf16.gmra.mrb[24].mxu0 %v5569_v63  ;;  %1894 = vmatmul.mubr.bf16.gmra.mrb[24].mxu1 %v5569_v63  ;;  %v5671_v63 = vld [vmem:[#allocation7 + $0x12c] ss:$16 sps:$4 sm:$0xff]  }
 0x142   : > { %1713 = vmatpush1.bf16.msra.mxu0 %v5570_v0  ;;  %1939 = vmatpush1.bf16.msra.mxu1 %v5573_v1  ;;  %v5672_v0 = vld [vmem:[%s6565_s30 + $0xac] ss:$16 sps:$4 sm:$0xff]   ;;  %v5666_v1 = vld [vmem:[#allocation7 + $0x120] ss:$16 sps:$4 sm:$0xff]  }
 0x143   : > { %1714 = vmatprep.subr.bf16.mxu0 %v5578_v2  ;;  %1940 = vmatprep.subr.bf16.mxu1 %v5581_v3  ;;  %v5669_v2 = vld [vmem:[#allocation7 + $0x128] ss:$16 sps:$4 sm:$0xff]   ;;  %v5677_v3 = vld [vmem:[#allocation7 + $0x144] ss:$16 sps:$4 sm:$0xff]  }
 0x144   : > { %1677 = vmatprep.mubr.bf16.mxu0 %v5582_v4  ;;  %1903 = vmatprep.mubr.bf16.mxu1 %v5582_v4  ;;  %v5680_v4 = vld [vmem:[#allocation7 + $0x14c] ss:$16 sps:$4 sm:$0xff]  }
 0x146   : > { %1715 = vmatpush1.bf16.msra.mxu0 %v5576_v5  ;;  %1941 = vmatpush1.bf16.msra.mxu1 %v5579_v6  ;;  %v5674_v5 = vld [vmem:[%s6565_s30 + $0xa8] ss:$16 sps:$4 sm:$0xff]   ;;  %v5675_v6 = vld [vmem:[#allocation7 + $0x140] ss:$16 sps:$4 sm:$0xff]  }
 0x147   : > { %1716 = vmatprep.subr.bf16.mxu0 %v5587_v7  ;;  %1942 = vmatprep.subr.bf16.mxu1 %v5590_v8  ;;  %v5678_v7 = vld [vmem:[#allocation7 + $0x148] ss:$16 sps:$4 sm:$0xff]   ;;  %v5683_v8 = vld [vmem:[#allocation7 + $0x164] ss:$16 sps:$4 sm:$0xff]  }
 0x149   : > { %1678 = vmatmul.mubr.bf16.gmra.mrb[28].mxu0 %v5584_v9  ;;  %1904 = vmatmul.mubr.bf16.gmra.mrb[28].mxu1 %v5584_v9  ;;  %v5686_v9 = vld [vmem:[#allocation7 + $0x16c] ss:$16 sps:$4 sm:$0xff]  }
 0x14a   : > { %1717 = vmatpush1.bf16.msra.mxu0 %v5585_v10  ;;  %1943 = vmatpush1.bf16.msra.mxu1 %v5588_v11  ;;  %v5687_v10 = vld [vmem:[%s6565_s30 + $0xcc] ss:$16 sps:$4 sm:$0xff]   ;;  %v5681_v11 = vld [vmem:[#allocation7 + $0x160] ss:$16 sps:$4 sm:$0xff]  }
 0x14b   : > { %1718 = vmatprep.subr.bf16.mxu0 %v5593_v12  ;;  %1944 = vmatprep.subr.bf16.mxu1 %v5596_v13  ;;  %v5684_v12 = vld [vmem:[#allocation7 + $0x168] ss:$16 sps:$4 sm:$0xff]   ;;  %v5692_v13 = vld [vmem:[#allocation7 + $0x184] ss:$16 sps:$4 sm:$0xff]  }
 0x14c   : > { %1720 = vmatprep.mubr.bf16.mxu0 %v5599_v14  ;;  %1946 = vmatprep.mubr.bf16.mxu1 %v5599_v14  ;;  %v5695_v14 = vld [vmem:[#allocation7 + $0x18c] ss:$16 sps:$4 sm:$0xff]  }
 0x14e   : > { %1719 = vmatpush1.bf16.msra.mxu0 %v5591_v15  ;;  %1945 = vmatpush1.bf16.msra.mxu1 %v5594_v16  ;;  %v5689_v15 = vld [vmem:[%s6565_s30 + $0xc8] ss:$16 sps:$4 sm:$0xff]   ;;  %v5690_v16 = vld [vmem:[#allocation7 + $0x180] ss:$16 sps:$4 sm:$0xff]  }
 0x14f   : > { %2827 = vmatprep.subr.bf16.mxu0 %v5602_v17  ;;  %3053 = vmatprep.subr.bf16.mxu1 %v5605_v18  ;;  %v5693_v17 = vld [vmem:[#allocation7 + $0x188] ss:$16 sps:$4 sm:$0xff]   ;;  %v5698_v18 = vld [vmem:[#allocation7 + $0x1a4] ss:$16 sps:$4 sm:$0xff]  }
 0x151   : > { %1721 = vmatmul.mubr.bf16.vlgmr.msra.gmra.mrb[0].mxu0 %v5597_v19  ;;  %1947 = vmatmul.mubr.bf16.vlgmr.msra.gmra.mrb[0].mxu1 %v5597_v19  ;;  %v5701_v19 = vld [vmem:[#allocation7 + $0x1ac] ss:$16 sps:$4 sm:$0xff]  }
 0x152   : > { %2828 = vmatpush1.bf16.msra.mxu0 %v5600_v20  ;;  %3054 = vmatpush1.bf16.msra.mxu1 %v5603_v21  ;;  %v5702_v20 = vld [vmem:[%s6565_s30 + $0xec] ss:$16 sps:$4 sm:$0xff]   ;;  %v5696_v21 = vld [vmem:[#allocation7 + $0x1a0] ss:$16 sps:$4 sm:$0xff]  }
 0x153   : > { %2829 = vmatprep.subr.bf16.mxu0 %v5608_v22  ;;  %3055 = vmatprep.subr.bf16.mxu1 %v5611_v23  ;;  %v5699_v22 = vld [vmem:[#allocation7 + $0x1a8] ss:$16 sps:$4 sm:$0xff]   ;;  %v5707_v23 = vld [vmem:[#allocation7 + $0x1c4] ss:$16 sps:$4 sm:$0xff]  }
 0x154   : > { %1730 = vmatprep.mubr.bf16.mxu0 %v5612_v24  ;;  %1956 = vmatprep.mubr.bf16.mxu1 %v5612_v24  ;;  %v5710_v24 = vld [vmem:[#allocation7 + $0x1cc] ss:$16 sps:$4 sm:$0xff]  }
 0x156   : > { %2830 = vmatpush1.bf16.msra.mxu0 %v5606_v25  ;;  %3056 = vmatpush1.bf16.msra.mxu1 %v5609_v26  ;;  %v5704_v25 = vld [vmem:[%s6565_s30 + $0xe8] ss:$16 sps:$4 sm:$0xff]   ;;  %v5705_v26 = vld [vmem:[#allocation7 + $0x1c0] ss:$16 sps:$4 sm:$0xff]   ;;  %s6149_s30 = sshll.u32 %s6241_s17, 4  ;;  %s6150_s30 = int_to_ptr.vmem [resolvable:$false] %s6149_s30 }
 0x157   : > { %2831 = vmatprep.subr.bf16.mxu0 %v5617_v27  ;;  %3057 = vmatprep.subr.bf16.mxu1 %v5620_v28  ;;  %v5708_v27 = vld [vmem:[#allocation7 + $0x1c8] ss:$16 sps:$4 sm:$0xff]   ;;  %v5713_v28 = vld [vmem:[#allocation7 + $0x1e4] ss:$16 sps:$4 sm:$0xff]   ;;  %s6151_s15 = scalar_lea.vmem %s6150_s30, 4096  ;;  %p6152_p10 = scmp.lt.s32.totalorder %s7028_s23, %s6150_s30 }
 0x158   : > { %p6153_p5 = scmp.lt.s32.totalorder %s6151_s15, %s6145_s14 }
 0x159   : > { %1731 = vmatmul.mubr.bf16.gmra.mrb[4].mxu0 %v5614_v29  ;;  %1957 = vmatmul.mubr.bf16.gmra.mrb[4].mxu1 %v5614_v29  ;;  %v5716_v29 = vld [vmem:[#allocation7 + $0x1ec] ss:$16 sps:$4 sm:$0xff]  }
 0x15a   : > { %2832 = vmatpush1.bf16.msra.mxu0 %v5615_v30  ;;  %3058 = vmatpush1.bf16.msra.mxu1 %v5618_v31  ;;  %v5719_v30 = vld [vmem:[%s6558_s2 + $0x4] ss:$16 sps:$4 sm:$0xff]   ;;  %v5711_v31 = vld [vmem:[#allocation7 + $0x1e0] ss:$16 sps:$4 sm:$0xff]   ;;  %p6154_p9 = por %p6153_p5, %p6152_p10 }
 0x15b   : > { %2833 = vmatprep.subr.bf16.mxu0 %v5623_v32  ;;  %3059 = vmatprep.subr.bf16.mxu1 %v5626_v33  ;;  %v5714_v32 = vld [vmem:[#allocation7 + $0x1e8] ss:$16 sps:$4 sm:$0xff]   ;;  %v5722_v33 = vld [vmem:[#allocation7 + $0x204] ss:$16 sps:$4 sm:$0xff]  }
 0x15c   : > { %1740 = vmatprep.mubr.bf16.mxu0 %v5627_v34  ;;  %1966 = vmatprep.mubr.bf16.mxu1 %v5627_v34  ;;  %v5725_v34 = vld [vmem:[#allocation7 + $0x20c] ss:$16 sps:$4 sm:$0xff]   ;;  %p6155_p8 = pnand %p6154_p9, %p6148_p6 }
 0x15e   : > { %2834 = vmatpush1.bf16.msra.mxu0 %v5621_v35  ;;  %3060 = vmatpush1.bf16.msra.mxu1 %v5624_v36  ;;  %v5717_v35 = vld [vmem:[%s6558_s2] ss:$16 sps:$4 sm:$0xff]  }
 0x15f   : > { %2835 = vmatprep.subr.bf16.mxu0 %v5632_v37  ;;  %3061 = vmatprep.subr.bf16.mxu1 %v5635_v38  ;;  %v5720_v36 = vld [vmem:[#allocation7 + $0x200] ss:$16 sps:$4 sm:$0xff]   ;;  %v5723_v37 = vld [vmem:[#allocation7 + $0x208] ss:$16 sps:$4 sm:$0xff]   ;;  %v5728_v38 = vld [vmem:[#allocation7 + $0x224] ss:$16 sps:$4 sm:$0xff]  }
 0x161   : > { %1741 = vmatmul.mubr.bf16.gmra.mrb[8].mxu0 %v5629_v39  ;;  %1967 = vmatmul.mubr.bf16.gmra.mrb[8].mxu1 %v5629_v39  ;;  %v5731_v39 = vld [vmem:[#allocation7 + $0x22c] ss:$16 sps:$4 sm:$0xff]  }
 0x162   : > { %2836 = vmatpush1.bf16.msra.mxu0 %v5630_v40  ;;  %3062 = vmatpush1.bf16.msra.mxu1 %v5633_v41  ;;  %v5732_v40 = vld [vmem:[%s6558_s2 + $0x24] ss:$16 sps:$4 sm:$0xff]   ;;  %v5726_v41 = vld [vmem:[#allocation7 + $0x220] ss:$16 sps:$4 sm:$0xff]  }
 0x163   : > { %2837 = vmatprep.subr.bf16.mxu0 %v5638_v42  ;;  %3063 = vmatprep.subr.bf16.mxu1 %v5641_v43  ;;  %v5729_v42 = vld [vmem:[#allocation7 + $0x228] ss:$16 sps:$4 sm:$0xff]   ;;  %v5737_v43 = vld [vmem:[#allocation7 + $0x244] ss:$16 sps:$4 sm:$0xff]  }
 0x164   : > { %1750 = vmatprep.mubr.bf16.mxu0 %v5642_v44  ;;  %1976 = vmatprep.mubr.bf16.mxu1 %v5642_v44  ;;  %v5740_v44 = vld [vmem:[#allocation7 + $0x24c] ss:$16 sps:$4 sm:$0xff]  }
 0x166   : > { %2838 = vmatpush1.bf16.msra.mxu0 %v5636_v45  ;;  %3064 = vmatpush1.bf16.msra.mxu1 %v5639_v46  ;;  %v5734_v45 = vld [vmem:[%s6558_s2 + $0x20] ss:$16 sps:$4 sm:$0xff]  }
 0x167   : > { %2839 = vmatprep.subr.bf16.mxu0 %v5647_v47  ;;  %3065 = vmatprep.subr.bf16.mxu1 %v5650_v48  ;;  %v5735_v46 = vld [vmem:[#allocation7 + $0x240] ss:$16 sps:$4 sm:$0xff]   ;;  %v5738_v47 = vld [vmem:[#allocation7 + $0x248] ss:$16 sps:$4 sm:$0xff]   ;;  %v5743_v48 = vld [vmem:[#allocation7 + $0x264] ss:$16 sps:$4 sm:$0xff]  }
 0x169   : > { %1751 = vmatmul.mubr.bf16.gmra.mrb[12].mxu0 %v5644_v49  ;;  %1977 = vmatmul.mubr.bf16.gmra.mrb[12].mxu1 %v5644_v49  ;;  %v5746_v49 = vld [vmem:[#allocation7 + $0x26c] ss:$16 sps:$4 sm:$0xff]  }
 0x16a   : > { %2840 = vmatpush1.bf16.msra.mxu0 %v5645_v50  ;;  %3066 = vmatpush1.bf16.msra.mxu1 %v5648_v51  ;;  %v5747_v50 = vld [vmem:[%s6558_s2 + $0x44] ss:$16 sps:$4 sm:$0xff]   ;;  %v5741_v51 = vld [vmem:[#allocation7 + $0x260] ss:$16 sps:$4 sm:$0xff]  }
 0x16b   : > { %2841 = vmatprep.subr.bf16.mxu0 %v5653_v52  ;;  %3067 = vmatprep.subr.bf16.mxu1 %v5656_v53  ;;  %v5744_v52 = vld [vmem:[#allocation7 + $0x268] ss:$16 sps:$4 sm:$0xff]   ;;  %v5752_v53 = vld [vmem:[#allocation7 + $0x284] ss:$16 sps:$4 sm:$0xff]  }
 0x16c   : > { %1760 = vmatprep.mubr.bf16.mxu0 %v5657_v54  ;;  %1986 = vmatprep.mubr.bf16.mxu1 %v5657_v54  ;;  %v5755_v54 = vld [vmem:[#allocation7 + $0x28c] ss:$16 sps:$4 sm:$0xff]  }
 0x16e   : > { %2842 = vmatpush1.bf16.msra.mxu0 %v5651_v55  ;;  %3068 = vmatpush1.bf16.msra.mxu1 %v5654_v56  ;;  %v5749_v55 = vld [vmem:[%s6558_s2 + $0x40] ss:$16 sps:$4 sm:$0xff]  }
 0x16f   : > { %2843 = vmatprep.subr.bf16.mxu0 %v5662_v57  ;;  %3069 = vmatprep.subr.bf16.mxu1 %v5665_v58  ;;  %v5750_v56 = vld [vmem:[#allocation7 + $0x280] ss:$16 sps:$4 sm:$0xff]   ;;  %v5753_v57 = vld [vmem:[#allocation7 + $0x288] ss:$16 sps:$4 sm:$0xff]   ;;  %v5758_v58 = vld [vmem:[#allocation7 + $0x2a4] ss:$16 sps:$4 sm:$0xff]  }
 0x171   : > { %1761 = vmatmul.mubr.bf16.gmra.mrb[16].mxu0 %v5659_v59  ;;  %1987 = vmatmul.mubr.bf16.gmra.mrb[16].mxu1 %v5659_v59  ;;  %v5761_v59 = vld [vmem:[#allocation7 + $0x2ac] ss:$16 sps:$4 sm:$0xff]  }
 0x172   : > { %2844 = vmatpush1.bf16.msra.mxu0 %v5660_v60  ;;  %3070 = vmatpush1.bf16.msra.mxu1 %v5663_v61  ;;  %v5762_v60 = vld [vmem:[%s6558_s2 + $0x64] ss:$16 sps:$4 sm:$0xff]   ;;  %v5756_v61 = vld [vmem:[#allocation7 + $0x2a0] ss:$16 sps:$4 sm:$0xff]  }
 0x173   : > { %2845 = vmatprep.subr.bf16.mxu0 %v5668_v62  ;;  %3071 = vmatprep.subr.bf16.mxu1 %v5671_v63  ;;  %v5759_v62 = vld [vmem:[#allocation7 + $0x2a8] ss:$16 sps:$4 sm:$0xff]   ;;  %v5767_v63 = vld [vmem:[#allocation7 + $0x2c4] ss:$16 sps:$4 sm:$0xff]  }
 0x174   : > { %1770 = vmatprep.mubr.bf16.mxu0 %v5672_v0  ;;  %1996 = vmatprep.mubr.bf16.mxu1 %v5672_v0  ;;  %v5770_v0 = vld [vmem:[#allocation7 + $0x2cc] ss:$16 sps:$4 sm:$0xff]  }
 0x176   : > { %2846 = vmatpush1.bf16.msra.mxu0 %v5666_v1  ;;  %3072 = vmatpush1.bf16.msra.mxu1 %v5669_v2  ;;  %v5764_v1 = vld [vmem:[%s6558_s2 + $0x60] ss:$16 sps:$4 sm:$0xff]  }
 0x177   : > { %2847 = vmatprep.subr.bf16.mxu0 %v5677_v3  ;;  %3073 = vmatprep.subr.bf16.mxu1 %v5680_v4  ;;  %v5765_v2 = vld [vmem:[#allocation7 + $0x2c0] ss:$16 sps:$4 sm:$0xff]   ;;  %v5768_v3 = vld [vmem:[#allocation7 + $0x2c8] ss:$16 sps:$4 sm:$0xff]   ;;  %v5773_v4 = vld [vmem:[#allocation7 + $0x2e4] ss:$16 sps:$4 sm:$0xff]  }
 0x179   : > { %1771 = vmatmul.mubr.bf16.gmra.mrb[20].mxu0 %v5674_v5  ;;  %1997 = vmatmul.mubr.bf16.gmra.mrb[20].mxu1 %v5674_v5  ;;  %v5776_v5 = vld [vmem:[#allocation7 + $0x2ec] ss:$16 sps:$4 sm:$0xff]  }
 0x17a   : > { %2848 = vmatpush1.bf16.msra.mxu0 %v5675_v6  ;;  %3074 = vmatpush1.bf16.msra.mxu1 %v5678_v7  ;;  %v5777_v6 = vld [vmem:[%s6558_s2 + $0x84] ss:$16 sps:$4 sm:$0xff]   ;;  %v5771_v7 = vld [vmem:[#allocation7 + $0x2e0] ss:$16 sps:$4 sm:$0xff]  }
 0x17b   : > { %2849 = vmatprep.subr.bf16.mxu0 %v5683_v8  ;;  %3075 = vmatprep.subr.bf16.mxu1 %v5686_v9  ;;  %v5774_v8 = vld [vmem:[#allocation7 + $0x2e8] ss:$16 sps:$4 sm:$0xff]   ;;  %v5782_v9 = vld [vmem:[#allocation7 + $0x304] ss:$16 sps:$4 sm:$0xff]  }
 0x17c   : > { %1780 = vmatprep.mubr.bf16.mxu0 %v5687_v10  ;;  %2006 = vmatprep.mubr.bf16.mxu1 %v5687_v10  ;;  %v5785_v10 = vld [vmem:[#allocation7 + $0x30c] ss:$16 sps:$4 sm:$0xff]  }
 0x17e   : > { %2850 = vmatpush1.bf16.msra.mxu0 %v5681_v11  ;;  %3076 = vmatpush1.bf16.msra.mxu1 %v5684_v12  ;;  %v5779_v11 = vld [vmem:[%s6558_s2 + $0x80] ss:$16 sps:$4 sm:$0xff]  }
 0x17f   : > { %2851 = vmatprep.subr.bf16.mxu0 %v5692_v13  ;;  %3077 = vmatprep.subr.bf16.mxu1 %v5695_v14  ;;  %v5780_v12 = vld [vmem:[#allocation7 + $0x300] ss:$16 sps:$4 sm:$0xff]   ;;  %v5783_v13 = vld [vmem:[#allocation7 + $0x308] ss:$16 sps:$4 sm:$0xff]   ;;  %v5788_v14 = vld [vmem:[#allocation7 + $0x324] ss:$16 sps:$4 sm:$0xff]  }
 0x181   : > { %1781 = vmatmul.mubr.bf16.gmra.mrb[24].mxu0 %v5689_v15  ;;  %2007 = vmatmul.mubr.bf16.gmra.mrb[24].mxu1 %v5689_v15  ;;  %v5791_v15 = vld [vmem:[#allocation7 + $0x32c] ss:$16 sps:$4 sm:$0xff]  }
 0x182   : > { %2852 = vmatpush1.bf16.msra.mxu0 %v5690_v16  ;;  %3078 = vmatpush1.bf16.msra.mxu1 %v5693_v17  ;;  %v5792_v16 = vld [vmem:[%s6558_s2 + $0xa4] ss:$16 sps:$4 sm:$0xff]   ;;  %v5786_v17 = vld [vmem:[#allocation7 + $0x320] ss:$16 sps:$4 sm:$0xff]  }
 0x183   : > { %2853 = vmatprep.subr.bf16.mxu0 %v5698_v18  ;;  %3079 = vmatprep.subr.bf16.mxu1 %v5701_v19  ;;  %v5789_v18 = vld [vmem:[#allocation7 + $0x328] ss:$16 sps:$4 sm:$0xff]   ;;  %v5797_v19 = vld [vmem:[#allocation7 + $0x344] ss:$16 sps:$4 sm:$0xff]  }
 0x184   : > { %1790 = vmatprep.mubr.bf16.mxu0 %v5702_v20  ;;  %2016 = vmatprep.mubr.bf16.mxu1 %v5702_v20  ;;  %v5800_v20 = vld [vmem:[#allocation7 + $0x34c] ss:$16 sps:$4 sm:$0xff]  }
 0x186   : > { %2854 = vmatpush1.bf16.msra.mxu0 %v5696_v21  ;;  %3080 = vmatpush1.bf16.msra.mxu1 %v5699_v22  ;;  %v5794_v21 = vld [vmem:[%s6558_s2 + $0xa0] ss:$16 sps:$4 sm:$0xff]  }
 0x187   : > { %2855 = vmatprep.subr.bf16.mxu0 %v5707_v23  ;;  %3081 = vmatprep.subr.bf16.mxu1 %v5710_v24  ;;  %v5795_v22 = vld [vmem:[#allocation7 + $0x340] ss:$16 sps:$4 sm:$0xff]   ;;  %v5798_v23 = vld [vmem:[#allocation7 + $0x348] ss:$16 sps:$4 sm:$0xff]   ;;  %v5803_v24 = vld [vmem:[#allocation7 + $0x364] ss:$16 sps:$4 sm:$0xff]  }
 0x189   : > { %1791 = vmatmul.mubr.bf16.gmra.mrb[28].mxu0 %v5704_v25  ;;  %2017 = vmatmul.mubr.bf16.gmra.mrb[28].mxu1 %v5704_v25  ;;  %v5806_v25 = vld [vmem:[#allocation7 + $0x36c] ss:$16 sps:$4 sm:$0xff]  }
 0x18a   : > { %2856 = vmatpush1.bf16.msra.mxu0 %v5705_v26  ;;  %3082 = vmatpush1.bf16.msra.mxu1 %v5708_v27  ;;  %v5807_v26 = vld [vmem:[%s6558_s2 + $0xc4] ss:$16 sps:$4 sm:$0xff]   ;;  %v5801_v27 = vld [vmem:[#allocation7 + $0x360] ss:$16 sps:$4 sm:$0xff]  }
 0x18b   : > { %2857 = vmatprep.subr.bf16.mxu0 %v5713_v28  ;;  %3083 = vmatprep.subr.bf16.mxu1 %v5716_v29  ;;  %v5804_v28 = vld [vmem:[#allocation7 + $0x368] ss:$16 sps:$4 sm:$0xff]   ;;  %v5812_v29 = vld [vmem:[#allocation7 + $0x384] ss:$16 sps:$4 sm:$0xff]  }
 0x18c   : > { %2859 = vmatprep.mubr.bf16.mxu0 %v5719_v30  ;;  %3085 = vmatprep.mubr.bf16.mxu1 %v5719_v30  ;;  %v5809_v30 = vld [vmem:[%s6558_s2 + $0xc0] ss:$16 sps:$4 sm:$0xff]  }
 0x18e   : > { %2858 = vmatpush1.bf16.msra.mxu0 %v5711_v31  ;;  %3084 = vmatpush1.bf16.msra.mxu1 %v5714_v32  ;;  %v5815_v31 = vld [vmem:[#allocation7 + $0x38c] ss:$16 sps:$4 sm:$0xff]   ;;  %v5810_v32 = vld [vmem:[#allocation7 + $0x380] ss:$16 sps:$4 sm:$0xff]  }
 0x18f   : > { %2940 = vmatprep.subr.bf16.mxu0 %v5722_v33  ;;  %3166 = vmatprep.subr.bf16.mxu1 %v5725_v34  ;;  %v5813_v33 = vld [vmem:[#allocation7 + $0x388] ss:$16 sps:$4 sm:$0xff]   ;;  %v5818_v34 = vld [vmem:[#allocation7 + $0x3a4] ss:$16 sps:$4 sm:$0xff]  }
 0x191   : > { %2860 = vmatmul.mubr.bf16.vlgmr.msra.gmra.mrb[0].mxu0 %v5717_v35  ;;  %3086 = vmatmul.mubr.bf16.vlgmr.msra.gmra.mrb[0].mxu1 %v5717_v35  ;;  %v5821_v35 = vld [vmem:[#allocation7 + $0x3ac] ss:$16 sps:$4 sm:$0xff]  }
 0x192   : > { %2941 = vmatpush1.bf16.msra.mxu0 %v5720_v36  ;;  %3167 = vmatpush1.bf16.msra.mxu1 %v5723_v37  ;;  %v5822_v36 = vld [vmem:[%s6558_s2 + $0xe4] ss:$16 sps:$4 sm:$0xff]   ;;  %v5816_v37 = vld [vmem:[#allocation7 + $0x3a0] ss:$16 sps:$4 sm:$0xff]  }
 0x193   : > { %2942 = vmatprep.subr.bf16.mxu0 %v5728_v38  ;;  %3168 = vmatprep.subr.bf16.mxu1 %v5731_v39  ;;  %v5819_v38 = vld [vmem:[#allocation7 + $0x3a8] ss:$16 sps:$4 sm:$0xff]   ;;  %v5827_v39 = vld [vmem:[#allocation7 + $0x3c4] ss:$16 sps:$4 sm:$0xff]  }
 0x194   : > { %2869 = vmatprep.mubr.bf16.mxu0 %v5732_v40  ;;  %3095 = vmatprep.mubr.bf16.mxu1 %v5732_v40  ;;  %v5830_v40 = vld [vmem:[#allocation7 + $0x3cc] ss:$16 sps:$4 sm:$0xff]  }
 0x196   : > { %2943 = vmatpush1.bf16.msra.mxu0 %v5726_v41  ;;  %3169 = vmatpush1.bf16.msra.mxu1 %v5729_v42  ;;  %v5824_v41 = vld [vmem:[%s6558_s2 + $0xe0] ss:$16 sps:$4 sm:$0xff]  }
 0x197   : > { %2944 = vmatprep.subr.bf16.mxu0 %v5737_v43  ;;  %3170 = vmatprep.subr.bf16.mxu1 %v5740_v44  ;;  %v5825_v42 = vld [vmem:[#allocation7 + $0x3c0] ss:$16 sps:$4 sm:$0xff]   ;;  %v5828_v43 = vld [vmem:[#allocation7 + $0x3c8] ss:$16 sps:$4 sm:$0xff]   ;;  %v5833_v44 = vld [vmem:[#allocation7 + $0x3e4] ss:$16 sps:$4 sm:$0xff]  }
 0x199   : > { %2870 = vmatmul.mubr.bf16.gmra.mrb[4].mxu0 %v5734_v45  ;;  %3096 = vmatmul.mubr.bf16.gmra.mrb[4].mxu1 %v5734_v45  ;;  %v5836_v45 = vld [vmem:[#allocation7 + $0x3ec] ss:$16 sps:$4 sm:$0xff]  }
 0x19a   : > { %2945 = vmatpush1.bf16.msra.mxu0 %v5735_v46  ;;  %3171 = vmatpush1.bf16.msra.mxu1 %v5738_v47  ;;  %v5839_v46 = vld [vmem:[%s6558_s2 + $0xc] ss:$16 sps:$4 sm:$0xff]   ;;  %v5831_v47 = vld [vmem:[#allocation7 + $0x3e0] ss:$16 sps:$4 sm:$0xff]  }
 0x19b   : > { %2946 = vmatprep.subr.bf16.mxu0 %v5743_v48  ;;  %3172 = vmatprep.subr.bf16.mxu1 %v5746_v49  ;;  %v5834_v48 = vld [vmem:[#allocation7 + $0x3e8] ss:$16 sps:$4 sm:$0xff]   ;;  %v5863_v49 = vld [vmem:[#allocation10 + $0x4] ss:$8 sps:$4 sm:$0xff]  }
 0x19c   : > { %2879 = vmatprep.mubr.bf16.mxu0 %v5747_v50  ;;  %3105 = vmatprep.mubr.bf16.mxu1 %v5747_v50  ;;  %v6632_v50 = vld [vmem:[#allocation10 + $0x104] ss:$8 sps:$4 sm:$0xff]  }
 0x19e   : > { %2947 = vmatpush1.bf16.msra.mxu0 %v5741_v51  ;;  %3173 = vmatpush1.bf16.msra.mxu1 %v5744_v52  ;;  %v5837_v51 = vld [vmem:[%s6558_s2 + $0x8] ss:$16 sps:$4 sm:$0xff]   ;;  %v5840_v52 = vld [vmem:[%s6558_s2 + $0x2c] ss:$16 sps:$4 sm:$0xff]  }
 0x19f   : > { %2948 = vmatprep.subr.bf16.mxu0 %v5752_v53  ;;  %3174 = vmatprep.subr.bf16.mxu1 %v5755_v54  ;;  %v5861_v53 = vld [vmem:[#allocation10] ss:$8 sps:$4 sm:$0xff]  }
 0x1a0   : > { %v6636_v54 = vld [vmem:[#allocation10 + $0x100] ss:$8 sps:$4 sm:$0xff]  }
 0x1a1   : > { %2880 = vmatmul.mubr.bf16.gmra.mrb[8].mxu0 %v5749_v55  ;;  %3106 = vmatmul.mubr.bf16.gmra.mrb[8].mxu1 %v5749_v55  ;;  %v5866_v55 = vld [vmem:[#allocation10 + $0x14] ss:$8 sps:$4 sm:$0xff]  }
 0x1a2   : > { %2949 = vmatpush1.bf16.msra.mxu0 %v5750_v56  ;;  %3175 = vmatpush1.bf16.msra.mxu1 %v5753_v57  ;;  %v6639_v56 = vld [vmem:[#allocation10 + $0x114] ss:$8 sps:$4 sm:$0xff]   ;;  %v5864_v57 = vld [vmem:[#allocation10 + $0x10] ss:$8 sps:$4 sm:$0xff]  }
 0x1a3   : > { %2950 = vmatprep.subr.bf16.mxu0 %v5758_v58  ;;  %3176 = vmatprep.subr.bf16.mxu1 %v5761_v59  ;;  %v6642_v58 = vld [vmem:[#allocation10 + $0x110] ss:$8 sps:$4 sm:$0xff]   ;;  %v5869_v59 = vld [vmem:[#allocation10 + $0x24] ss:$8 sps:$4 sm:$0xff]  }
 0x1a4   : > { %2889 = vmatprep.mubr.bf16.mxu0 %v5762_v60  ;;  %3115 = vmatprep.mubr.bf16.mxu1 %v5762_v60  ;;  %v6645_v60 = vld [vmem:[#allocation10 + $0x124] ss:$8 sps:$4 sm:$0xff]  }
 0x1a6   : > { %2951 = vmatpush1.bf16.msra.mxu0 %v5756_v61  ;;  %3177 = vmatpush1.bf16.msra.mxu1 %v5759_v62  ;;  %v5842_v61 = vld [vmem:[%s6558_s2 + $0x28] ss:$16 sps:$4 sm:$0xff]   ;;  %v5843_v62 = vld [vmem:[%s6558_s2 + $0x4c] ss:$16 sps:$4 sm:$0xff]  }
 0x1a7   : > { %2952 = vmatprep.subr.bf16.mxu0 %v5767_v63  ;;  %3178 = vmatprep.subr.bf16.mxu1 %v5770_v0  ;;  %v5867_v63 = vld [vmem:[#allocation10 + $0x20] ss:$8 sps:$4 sm:$0xff]  }
 0x1a8   : > { %v6650_v0 = vld [vmem:[#allocation10 + $0x120] ss:$8 sps:$4 sm:$0xff]  }
 0x1a9   : > { %2890 = vmatmul.mubr.bf16.gmra.mrb[12].mxu0 %v5764_v1  ;;  %3116 = vmatmul.mubr.bf16.gmra.mrb[12].mxu1 %v5764_v1  ;;  %v5872_v1 = vld [vmem:[#allocation10 + $0x34] ss:$8 sps:$4 sm:$0xff]  }
 0x1aa   : > { %2953 = vmatpush1.bf16.msra.mxu0 %v5765_v2  ;;  %3179 = vmatpush1.bf16.msra.mxu1 %v5768_v3  ;;  %v6653_v2 = vld [vmem:[#allocation10 + $0x134] ss:$8 sps:$4 sm:$0xff]   ;;  %v5870_v3 = vld [vmem:[#allocation10 + $0x30] ss:$8 sps:$4 sm:$0xff]  }
 0x1ab   : > { %2954 = vmatprep.subr.bf16.mxu0 %v5773_v4  ;;  %3180 = vmatprep.subr.bf16.mxu1 %v5776_v5  ;;  %v6656_v4 = vld [vmem:[#allocation10 + $0x130] ss:$8 sps:$4 sm:$0xff]   ;;  %v5875_v5 = vld [vmem:[#allocation10 + $0x44] ss:$8 sps:$4 sm:$0xff]  }
 0x1ac   : > { %2899 = vmatprep.mubr.bf16.mxu0 %v5777_v6  ;;  %3125 = vmatprep.mubr.bf16.mxu1 %v5777_v6  ;;  %v6659_v6 = vld [vmem:[#allocation10 + $0x144] ss:$8 sps:$4 sm:$0xff]  }
 0x1ae   : > { %2955 = vmatpush1.bf16.msra.mxu0 %v5771_v7  ;;  %3181 = vmatpush1.bf16.msra.mxu1 %v5774_v8  ;;  %v5845_v7 = vld [vmem:[%s6558_s2 + $0x48] ss:$16 sps:$4 sm:$0xff]   ;;  %v5846_v8 = vld [vmem:[%s6558_s2 + $0x6c] ss:$16 sps:$4 sm:$0xff]  }
 0x1af   : > { %2956 = vmatprep.subr.bf16.mxu0 %v5782_v9  ;;  %3182 = vmatprep.subr.bf16.mxu1 %v5785_v10  ;;  %v5873_v9 = vld [vmem:[#allocation10 + $0x40] ss:$8 sps:$4 sm:$0xff]  }
 0x1b0   : > { %v6664_v10 = vld [vmem:[#allocation10 + $0x140] ss:$8 sps:$4 sm:$0xff]  }
 0x1b1   : > { %2900 = vmatmul.mubr.bf16.gmra.mrb[16].mxu0 %v5779_v11  ;;  %3126 = vmatmul.mubr.bf16.gmra.mrb[16].mxu1 %v5779_v11  ;;  %v5878_v11 = vld [vmem:[#allocation10 + $0x54] ss:$8 sps:$4 sm:$0xff]  }
 0x1b2   : > { %2957 = vmatpush1.bf16.msra.mxu0 %v5780_v12  ;;  %3183 = vmatpush1.bf16.msra.mxu1 %v5783_v13  ;;  %v6667_v12 = vld [vmem:[#allocation10 + $0x154] ss:$8 sps:$4 sm:$0xff]   ;;  %v5876_v13 = vld [vmem:[#allocation10 + $0x50] ss:$8 sps:$4 sm:$0xff]  }
 0x1b3   : > { %2958 = vmatprep.subr.bf16.mxu0 %v5788_v14  ;;  %3184 = vmatprep.subr.bf16.mxu1 %v5791_v15  ;;  %v6670_v14 = vld [vmem:[#allocation10 + $0x150] ss:$8 sps:$4 sm:$0xff]   ;;  %v5881_v15 = vld [vmem:[#allocation10 + $0x64] ss:$8 sps:$4 sm:$0xff]  }
 0x1b4   : > { %2909 = vmatprep.mubr.bf16.mxu0 %v5792_v16  ;;  %3135 = vmatprep.mubr.bf16.mxu1 %v5792_v16  ;;  %v5848_v16 = vld [vmem:[%s6558_s2 + $0x68] ss:$16 sps:$4 sm:$0xff]  }
 0x1b6   : > { %2959 = vmatpush1.bf16.msra.mxu0 %v5786_v17  ;;  %3185 = vmatpush1.bf16.msra.mxu1 %v5789_v18  ;;  %v5849_v17 = vld [vmem:[%s6558_s2 + $0x8c] ss:$16 sps:$4 sm:$0xff]   ;;  %v5879_v18 = vld [vmem:[#allocation10 + $0x60] ss:$8 sps:$4 sm:$0xff]  }
 0x1b7   : > { %2960 = vmatprep.subr.bf16.mxu0 %v5797_v19  ;;  %3186 = vmatprep.subr.bf16.mxu1 %v5800_v20  ;;  %v5884_v19 = vld [vmem:[#allocation10 + $0x74] ss:$8 sps:$4 sm:$0xff]   ;;  %v5882_v20 = vld [vmem:[#allocation10 + $0x70] ss:$8 sps:$4 sm:$0xff]  }
 0x1b9   : > { %2910 = vmatmul.mubr.bf16.gmra.mrb[20].mxu0 %v5794_v21  ;;  %3136 = vmatmul.mubr.bf16.gmra.mrb[20].mxu1 %v5794_v21  ;;  %v5887_v21 = vld [vmem:[#allocation10 + $0x84] ss:$8 sps:$4 sm:$0xff]  }
 0x1ba   : > { %2961 = vmatpush1.bf16.msra.mxu0 %v5795_v22  ;;  %3187 = vmatpush1.bf16.msra.mxu1 %v5798_v23  ;;  %v5851_v22 = vld [vmem:[%s6558_s2 + $0x88] ss:$16 sps:$4 sm:$0xff]   ;;  %v5852_v23 = vld [vmem:[%s6558_s2 + $0xac] ss:$16 sps:$4 sm:$0xff]  }
 0x1bb   : > { %2962 = vmatprep.subr.bf16.mxu0 %v5803_v24  ;;  %3188 = vmatprep.subr.bf16.mxu1 %v5806_v25  ;;  %v5885_v24 = vld [vmem:[#allocation10 + $0x80] ss:$8 sps:$4 sm:$0xff]   ;;  %v5893_v25 = vld [vmem:[#allocation10 + $0x94] ss:$8 sps:$4 sm:$0xff]  }
 0x1bc   : > { %2919 = vmatprep.mubr.bf16.mxu0 %v5807_v26  ;;  %3145 = vmatprep.mubr.bf16.mxu1 %v5807_v26  ;;  %v5891_v26 = vld [vmem:[#allocation10 + $0x90] ss:$8 sps:$4 sm:$0xff]  }
 0x1be   : > { %2963 = vmatpush1.bf16.msra.mxu0 %v5801_v27  ;;  %3189 = vmatpush1.bf16.msra.mxu1 %v5804_v28  ;;  %v5899_v27 = vld [vmem:[#allocation10 + $0xa4] ss:$8 sps:$4 sm:$0xff]   ;;  %v5854_v28 = vld [vmem:[%s6558_s2 + $0xa8] ss:$16 sps:$4 sm:$0xff]  }
 0x1bf   : > { %2964 = vmatprep.subr.bf16.mxu0 %v5812_v29  ;;  %3190 = vmatprep.subr.bf16.mxu1 %v5815_v31  ;;  %v5855_v29 = vld [vmem:[%s6558_s2 + $0xcc] ss:$16 sps:$4 sm:$0xff]  }
 0x1c0   : > { %v5905_v31 = vld [vmem:[#allocation10 + $0xb4] ss:$8 sps:$4 sm:$0xff]  }
 0x1c1   : > { %2920 = vmatmul.mubr.bf16.gmra.mrb[24].mxu0 %v5809_v30  ;;  %3146 = vmatmul.mubr.bf16.gmra.mrb[24].mxu1 %v5809_v30  ;;  %v5897_v30 = vld [vmem:[#allocation10 + $0xa0] ss:$8 sps:$4 sm:$0xff]  }
 0x1c2   : > { %2965 = vmatpush1.bf16.msra.mxu0 %v5810_v32  ;;  %3191 = vmatpush1.bf16.msra.mxu1 %v5813_v33  ;;  %v5903_v32 = vld [vmem:[#allocation10 + $0xb0] ss:$8 sps:$4 sm:$0xff]   ;;  %v5911_v33 = vld [vmem:[#allocation10 + $0xc4] ss:$8 sps:$4 sm:$0xff]  }
 0x1c3   : > { %2966 = vmatprep.subr.bf16.mxu0 %v5818_v34  ;;  %3192 = vmatprep.subr.bf16.mxu1 %v5821_v35  ;;  %v5857_v34 = vld [vmem:[%s6558_s2 + $0xc8] ss:$16 sps:$4 sm:$0xff]   ;;  %v5858_v35 = vld [vmem:[%s6558_s2 + $0xec] ss:$16 sps:$4 sm:$0xff]  }
 0x1c4   : > { %2929 = vmatprep.mubr.bf16.mxu0 %v5822_v36  ;;  %3155 = vmatprep.mubr.bf16.mxu1 %v5822_v36  ;;  %v5909_v36 = vld [vmem:[#allocation10 + $0xc0] ss:$8 sps:$4 sm:$0xff]  }
 0x1c6   : > { %2967 = vmatpush1.bf16.msra.mxu0 %v5816_v37  ;;  %3193 = vmatpush1.bf16.msra.mxu1 %v5819_v38  ;;  %v5917_v37 = vld [vmem:[#allocation10 + $0xd4] ss:$8 sps:$4 sm:$0xff]   ;;  %v5915_v38 = vld [vmem:[#allocation10 + $0xd0] ss:$8 sps:$4 sm:$0xff]  }
 0x1c7   : > { %2968 = vmatprep.subr.bf16.mxu0 %v5827_v39  ;;  %3194 = vmatprep.subr.bf16.mxu1 %v5830_v40  ;;  %v5860_v39 = vld [vmem:[%s6558_s2 + $0xe8] ss:$16 sps:$4 sm:$0xff]   ;;  %v5923_v40 = vld [vmem:[#allocation10 + $0xe4] ss:$8 sps:$4 sm:$0xff]   ;;  %s7026_s2 = scalar_lea.hbm %s7122_s20, %s4928_s22 }
 0x1c9   : > { %2930 = vmatmul.mubr.bf16.gmra.mrb[28].mxu0 %v5824_v41  ;;  %3156 = vmatmul.mubr.bf16.gmra.mrb[28].mxu1 %v5824_v41  ;;  %v6683_v41 = vld [vmem:[#allocation10 + $0x164] ss:$8 sps:$4 sm:$0xff]  }
 0x1ca   : > { %2969 = vmatpush1.bf16.msra.mxu0 %v5825_v42  ;;  %3195 = vmatpush1.bf16.msra.mxu1 %v5828_v43  ;;  %v5921_v42 = vld [vmem:[#allocation10 + $0xe0] ss:$8 sps:$4 sm:$0xff]  }
 0x1cb   : > { %2970 = vmatprep.subr.bf16.mxu0 %v5833_v44  ;;  %3196 = vmatprep.subr.bf16.mxu1 %v5836_v45  ;;  %v6685_v43 = vld [vmem:[#allocation10 + $0x160] ss:$8 sps:$4 sm:$0xff]   ;;  %v5929_v44 = vld [vmem:[#allocation10 + $0xf4] ss:$8 sps:$4 sm:$0xff]  }
 0x1cc   : > { %2972 = vmatprep.mubr.bf16.mxu0 %v5839_v46  ;;  %3198 = vmatprep.mubr.bf16.mxu1 %v5839_v46  ;;  %v6689_v45 = vld [vmem:[#allocation10 + $0x174] ss:$8 sps:$4 sm:$0xff]   ;;  %v5927_v46 = vld [vmem:[#allocation10 + $0xf0] ss:$8 sps:$4 sm:$0xff]  }
 0x1ce   : > { %2971 = vmatpush1.bf16.msra.mxu0 %v5831_v47  ;;  %3197 = vmatpush1.bf16.msra.mxu1 %v5834_v48  ;;  %v6691_v47 = vld [vmem:[#allocation10 + $0x170] ss:$8 sps:$4 sm:$0xff]   ;;  %v6696_v48 = vld [vmem:[#allocation10 + $0x184] ss:$8 sps:$4 sm:$0xff]  }
 0x1cf   : > { %3857 = vmatprep.subr.bf16.mxu0 %v5863_v49  ;;  %4993 = vmatprep.subr.bf16.mxu1 %v6632_v50  ;;  %v6698_v49 = vld [vmem:[#allocation10 + $0x180] ss:$8 sps:$4 sm:$0xff]  }
 0x1d1   : > { %2973 = vmatmul.mubr.bf16.vlgmr.msra.gmra.mrb[0].mxu0 %v5837_v51  ;;  %3199 = vmatmul.mubr.bf16.vlgmr.msra.gmra.mrb[0].mxu1 %v5837_v51  ;;  %v6702_v51 = vld [vmem:[#allocation10 + $0x194] ss:$8 sps:$4 sm:$0xff]  }
 0x1d2   : > { %2982 = vmatprep.mubr.bf16.mxu0 %v5840_v52  ;;  %3208 = vmatprep.mubr.bf16.mxu1 %v5840_v52  ;;  %v6704_v52 = vld [vmem:[#allocation10 + $0x190] ss:$8 sps:$4 sm:$0xff]  }
 0x1d3   : > { %3858 = vmatpush1.bf16.msra.mxu0 %v5861_v53  ;;  %5009 = vmatpush1.bf16.msra.mxu1 %v6636_v54  ;;  %v6708_v53 = vld [vmem:[#allocation10 + $0x1a4] ss:$8 sps:$4 sm:$0xff]  }
 0x1d4   : > { %3859 = vmatprep.subr.bf16.mxu0 %v5866_v55  ;;  %4994 = vmatprep.subr.bf16.mxu1 %v6639_v56  ;;  %v6710_v55 = vld [vmem:[#allocation10 + $0x1a0] ss:$8 sps:$4 sm:$0xff]  }
 0x1d7   : > { %3860 = vmatpush1.bf16.msra.mxu0 %v5864_v57  ;;  %5010 = vmatpush1.bf16.msra.mxu1 %v6642_v58  ;;  %v6716_v57 = vld [vmem:[#allocation10 + $0x1b0] ss:$8 sps:$4 sm:$0xff]  }
 0x1d8   : > { %3861 = vmatprep.subr.bf16.mxu0 %v5869_v59  ;;  %4995 = vmatprep.subr.bf16.mxu1 %v6645_v60  ;;  %v6720_v59 = vld [vmem:[#allocation10 + $0x1c4] ss:$8 sps:$4 sm:$0xff]  }
 0x1d9   : > { %2983 = vmatmul.mubr.bf16.gmra.mrb[4].mxu0 %v5842_v61  ;;  %3209 = vmatmul.mubr.bf16.gmra.mrb[4].mxu1 %v5842_v61  ;;  %v6722_v61 = vld [vmem:[#allocation10 + $0x1c0] ss:$8 sps:$4 sm:$0xff]  }
 0x1da   : > { %2992 = vmatprep.mubr.bf16.mxu0 %v5843_v62  ;;  %3218 = vmatprep.mubr.bf16.mxu1 %v5843_v62  ;;  %v6726_v62 = vld [vmem:[#allocation10 + $0x1d4] ss:$8 sps:$4 sm:$0xff]  }
 0x1db   : > { %3862 = vmatpush1.bf16.msra.mxu0 %v5867_v63  ;;  %5011 = vmatpush1.bf16.msra.mxu1 %v6650_v0  ;;  %v6728_v63 = vld [vmem:[#allocation10 + $0x1d0] ss:$8 sps:$4 sm:$0xff]  }
 0x1dc   : > { %3863 = vmatprep.subr.bf16.mxu0 %v5872_v1  ;;  %4996 = vmatprep.subr.bf16.mxu1 %v6653_v2  ;;  %v6732_v1 = vld [vmem:[#allocation10 + $0x1e4] ss:$8 sps:$4 sm:$0xff]  }
 0x1df   : > { %3864 = vmatpush1.bf16.msra.mxu0 %v5870_v3  ;;  %5012 = vmatpush1.bf16.msra.mxu1 %v6656_v4  ;;  %v6734_v3 = vld [vmem:[#allocation10 + $0x1e0] ss:$8 sps:$4 sm:$0xff]  }
 0x1e0   : > { %3865 = vmatprep.subr.bf16.mxu0 %v5875_v5  ;;  %4997 = vmatprep.subr.bf16.mxu1 %v6659_v6  ;;  %v6738_v5 = vld [vmem:[#allocation10 + $0x1f4] ss:$8 sps:$4 sm:$0xff]  }
 0x1e1   : > { %2993 = vmatmul.mubr.bf16.gmra.mrb[8].mxu0 %v5845_v7  ;;  %3219 = vmatmul.mubr.bf16.gmra.mrb[8].mxu1 %v5845_v7  ;;  %v6740_v7 = vld [vmem:[#allocation10 + $0x1f0] ss:$8 sps:$4 sm:$0xff]  }
 0x1e2   : > { %3002 = vmatprep.mubr.bf16.mxu0 %v5846_v8  ;;  %3228 = vmatprep.mubr.bf16.mxu1 %v5846_v8  ;;  %v3281_v8 = vlaneseq }
 0x1e3   : > { %3866 = vmatpush1.bf16.msra.mxu0 %v5873_v9  ;;  %5013 = vmatpush1.bf16.msra.mxu1 %v6664_v10 }
 0x1e4   : > { %3867 = vmatprep.subr.bf16.mxu0 %v5878_v11  ;;  %4998 = vmatprep.subr.bf16.mxu1 %v6667_v12  ;;  %v6744_v9 = vshrl.u32 %v3281_v8, 7 }
 0x1e6   : > { %v3283_v11 = vsub.s32 0, %v6744_v9 }
 0x1e7   : > { %3868 = vmatpush1.bf16.msra.mxu0 %v5876_v13  ;;  %5014 = vmatpush1.bf16.msra.mxu1 %v6670_v14  ;;  %v3291_v13 = vsub.s32 2, %v6744_v9 }
 0x1e8   : > { %3869 = vmatprep.subr.bf16.mxu0 %v5881_v15  ;;  %4999 = vmatprep.subr.bf16.mxu1 %v6683_v41  ;;  %v3279_v15 = vld [vmem:[%s7079_s4] sm:$0xf] }
 0x1e9   : > { %3003 = vmatmul.mubr.bf16.gmra.mrb[12].mxu0 %v5848_v16  ;;  %3229 = vmatmul.mubr.bf16.gmra.mrb[12].mxu1 %v5848_v16  ;;  %v3287_v16 = vsub.s32 1, %v6744_v9 }
 0x1ea   : > { %3012 = vmatprep.mubr.bf16.mxu0 %v5849_v17  ;;  %3238 = vmatprep.mubr.bf16.mxu1 %v5849_v17  ;;  %v3295_v17 = vsub.s32 3, %v6744_v9 }
 0x1eb   : > { %3870 = vmatpush1.bf16.msra.mxu0 %v5879_v18  ;;  %5015 = vmatpush1.bf16.msra.mxu1 %v6685_v43  ;;  %v6755_v18 = vrot.slane %v3279_v15, %v3283_v11 }
 0x1ec   : > { %3871 = vmatprep.subr.bf16.mxu0 %v5884_v19  ;;  %5000 = vmatprep.subr.bf16.mxu1 %v6689_v45  ;;  %v6757_v19 = vrot.slane %v3279_v15, %v3291_v13 }
 0x1ef   : > { %3872 = vmatpush1.bf16.msra.mxu0 %v5882_v20  ;;  %5016 = vmatpush1.bf16.msra.mxu1 %v6691_v47  ;;  %v6761_v20 = vrot.slane %v3279_v15, %v3287_v16 }
 0x1f0   : > { %3873 = vmatprep.subr.bf16.mxu0 %v5887_v21  ;;  %5001 = vmatprep.subr.bf16.mxu1 %v6696_v48  ;;  %v6763_v21 = vrot.slane %v3279_v15, %v3295_v17 }
 0x1f1   : > { %3013 = vmatmul.mubr.bf16.gmra.mrb[16].mxu0 %v5851_v22  ;;  %3239 = vmatmul.mubr.bf16.gmra.mrb[16].mxu1 %v5851_v22 }
 0x1f2   : > { %3022 = vmatprep.mubr.bf16.mxu0 %v5852_v23  ;;  %3248 = vmatprep.mubr.bf16.mxu1 %v5852_v23 }
 0x1f3   : > { %3874 = vmatpush1.bf16.msra.mxu0 %v5885_v24  ;;  %5017 = vmatpush1.bf16.msra.mxu1 %v6698_v49 }
 0x1f4   : > { %3875 = vmatprep.subr.bf16.mxu0 %v5893_v25  ;;  %5002 = vmatprep.subr.bf16.mxu1 %v6702_v51 }
 0x1f7   : > { %3876 = vmatpush1.bf16.msra.mxu0 %v5891_v26  ;;  %5018 = vmatpush1.bf16.msra.mxu1 %v6704_v52 }
 0x1f8   : > { %3877 = vmatprep.subr.bf16.mxu0 %v5899_v27  ;;  %5003 = vmatprep.subr.bf16.mxu1 %v6708_v53 }
 0x1f9   : > { %3023 = vmatmul.mubr.bf16.gmra.mrb[20].mxu0 %v5854_v28  ;;  %3249 = vmatmul.mubr.bf16.gmra.mrb[20].mxu1 %v5854_v28 }
 0x1fa   : > { %3032 = vmatprep.mubr.bf16.mxu0 %v5855_v29  ;;  %3258 = vmatprep.mubr.bf16.mxu1 %v5855_v29 }
 0x1fb   : > { %3878 = vmatpush1.bf16.msra.mxu0 %v5897_v30  ;;  %5019 = vmatpush1.bf16.msra.mxu1 %v6710_v55 }
 0x1fc   : > { %3879 = vmatprep.subr.bf16.mxu0 %v5905_v31 }
 0x1ff   : > { %3880 = vmatpush1.bf16.msra.mxu0 %v5903_v32 }
 0x200   : > { %3881 = vmatprep.subr.bf16.mxu0 %v5911_v33 }
 0x201   : > { %3033 = vmatmul.mubr.bf16.gmra.mrb[24].mxu0 %v5857_v34  ;;  %3259 = vmatmul.mubr.bf16.gmra.mrb[24].mxu1 %v5857_v34 }
 0x202   : > { %3042 = vmatprep.mubr.bf16.mxu0 %v5858_v35  ;;  %3268 = vmatprep.mubr.bf16.mxu1 %v5858_v35 }
 0x203   : > { %3882 = vmatpush1.bf16.msra.mxu0 %v5909_v36 }
 0x204   : > { %3883 = vmatprep.subr.bf16.mxu0 %v5917_v37 }
 0x207   : > { %3884 = vmatpush1.bf16.msra.mxu0 %v5915_v38 }
 0x208   : > { %3885 = vmatprep.subr.bf16.mxu0 %v5923_v40 }
 0x209   : > { %3043 = vmatmul.mubr.bf16.gmra.mrb[28].mxu0 %v5860_v39  ;;  %3269 = vmatmul.mubr.bf16.gmra.mrb[28].mxu1 %v5860_v39 }
 0x20b   : > { %3886 = vmatpush1.bf16.msra.mxu0 %v5921_v42 }
 0x20c   : > { %3887 = vmatprep.subr.bf16.mxu0 %v5929_v44 }
 0x20f   : > { %3888 = vmatpush1.bf16.msra.mxu0 %v5927_v46 }
 0x210   : > { %3970 = vmatprep.subr.bf16.mxu0 %v6632_v50  ;;  %v6714_v50 = vld [vmem:[#allocation10 + $0x1b4] ss:$8 sps:$4 sm:$0xff]  }
 0x211   : > { %5004 = vmatprep.subr.bf16.mxu1 %v6714_v50 }
 0x212   : > { %5020 = vmatpush1.bf16.msra.mxu1 %v6716_v57 }
 0x213   : > { %5005 = vmatprep.subr.bf16.mxu1 %v6720_v59 }
 0x216   : > { %5021 = vmatpush1.bf16.msra.mxu1 %v6722_v61 }
 0x217   : > { %5006 = vmatprep.subr.bf16.mxu1 %v6726_v62 }
 0x21a   : > { %5022 = vmatpush1.bf16.msra.mxu1 %v6728_v63 }
 0x21b   : > { %5007 = vmatprep.subr.bf16.mxu1 %v6732_v1 }
 0x21e   : > { %5023 = vmatpush1.bf16.msra.mxu1 %v6734_v3 }
 0x21f   : > { %5008 = vmatprep.subr.bf16.mxu1 %v6738_v5 }
 0x222   : > { %5024 = vmatpush1.bf16.msra.mxu1 %v6740_v7 }
 0x2a4   : > { %v2974_v22 = vpop.f32.mrb[0].mxu0  ;;  %v3200_v23 = vpop.f32.mrb[0].mxu1 }
 0x2a5   : > { %v3301_v24 = vadd.f32 %v6755_v18, %v2974_v22  ;;  %v3303_v25 = vadd.f32 %v6757_v19, %v3200_v23  ;;  %v2976_v26 = vpop.f32.mrb[1].mxu0  ;;  %v3202_v27 = vpop.f32.mrb[1].mxu1 }
 0x2a6   : > { %v3302_v28 = vadd.f32 %v6761_v20, %v2976_v26  ;;  %v3304_v29 = vadd.f32 %v6763_v21, %v3202_v27  ;;  %v2978_v30 = vpop.f32.mrb[2].mxu0  ;;  %v3204_v31 = vpop.f32.mrb[2].mxu1 }
 0x2a7   : > { %v3305_v32 = vadd.f32 %v6755_v18, %v2978_v30  ;;  %v3307_v33 = vadd.f32 %v6757_v19, %v3204_v31  ;;  %v2980_v34 = vpop.f32.mrb[3].mxu0  ;;  %v3206_v35 = vpop.f32.mrb[3].mxu1  ;;  %v3365_v38 = vmax.f32 %v3301_v24, 0.0  ;;  %v3367_v39 = vmax.f32 %v3303_v25, 0.0 }
 0x2a8   : > { %v3306_v36 = vadd.f32 %v6761_v20, %v2980_v34  ;;  %v3308_v37 = vadd.f32 %v6763_v21, %v3206_v35  ;;  %v3366_v44 = vmax.f32 %v3302_v28, 0.0  ;;  %v3368_v46 = vmax.f32 %v3304_v29, 0.0 }
 0x2a9   : > { %v3369_v40 = vmax.f32 %v3305_v32, 0.0  ;;  %v3371_v42 = vmax.f32 %v3307_v33, 0.0 }
 0x2aa   : > { %v3370_v8 = vmax.f32 %v3306_v36, 0.0  ;;  %v3372_v13 = vmax.f32 %v3308_v37, 0.0 }
 0x2ab   : > { %v3429_v15 = vpack.c.bf16 %v3369_v40, %v3365_v38  ;;  %v6773_v17 = vpack.c.bf16 %v3371_v42, %v3367_v39 }
 0x2ac   : > { %v3430_v22 = vpack.c.bf16 %v3370_v8, %v3366_v44  ;;  %v6775_v23 = vpack.c.bf16 %v3372_v13, %v3368_v46  ;;  %v2984_v26 = vpop.f32.mrb[4].mxu0  ;;  %v3210_v27 = vpop.f32.mrb[4].mxu1 }
 0x2ad   : > { %v3309_v30 = vadd.f32 %v6755_v18, %v2984_v26  ;;  %v3311_v31 = vadd.f32 %v6757_v19, %v3210_v27  ;;  %v2986_v24 = vpop.f32.mrb[5].mxu0  ;;  %v3212_v25 = vpop.f32.mrb[5].mxu1 }
 0x2ae   : > { %v3310_v32 = vadd.f32 %v6761_v20, %v2986_v24  ;;  %v3312_v28 = vadd.f32 %v6763_v21, %v3212_v25  ;;  %v2988_v29 = vpop.f32.mrb[6].mxu0  ;;  %v3214_v33 = vpop.f32.mrb[6].mxu1  ;;  %3889 = vmatprep.mubr.bf16.mxu0 %v3430_v22 }
 0x2af   : > { %v3313_v34 = vadd.f32 %v6755_v18, %v2988_v29  ;;  %v3315_v35 = vadd.f32 %v6757_v19, %v3214_v33  ;;  %v2990_v36 = vpop.f32.mrb[7].mxu0  ;;  %v3216_v37 = vpop.f32.mrb[7].mxu1  ;;  %3890 = vmatmul.mubr.bf16.vlgmr.msra.gmra.mrb[32].mxu0 %v3429_v15  ;;  %v3373_v40 = vmax.f32 %v3309_v30, 0.0  ;;  %v3375_v42 = vmax.f32 %v3311_v31, 0.0 }
 0x2b0   : > { %v3314_v38 = vadd.f32 %v6761_v20, %v2990_v36  ;;  %v3316_v39 = vadd.f32 %v6763_v21, %v3216_v37  ;;  %3971 = vmatpush1.bf16.msra.mxu0 %v6636_v54  ;;  %v3374_v8 = vmax.f32 %v3310_v32, 0.0  ;;  %v3376_v13 = vmax.f32 %v3312_v28, 0.0 }
 0x2b1   : > { %v3377_v44 = vmax.f32 %v3313_v34, 0.0  ;;  %v3379_v46 = vmax.f32 %v3315_v35, 0.0  ;;  %3972 = vmatprep.subr.bf16.mxu0 %v6639_v56 }
 0x2b2   : > { %v3378_v22 = vmax.f32 %v3314_v38, 0.0  ;;  %v3380_v26 = vmax.f32 %v3316_v39, 0.0 }
 0x2b3   : > { %v3433_v27 = vpack.c.bf16 %v3377_v44, %v3373_v40  ;;  %v6787_v24 = vpack.c.bf16 %v3379_v46, %v3375_v42 }
 0x2b4   : > { %v3434_v15 = vpack.c.bf16 %v3378_v22, %v3374_v8  ;;  %v6789_v25 = vpack.c.bf16 %v3380_v26, %v3376_v13  ;;  %v2994_v29 = vpop.f32.mrb[8].mxu0  ;;  %v3220_v33 = vpop.f32.mrb[8].mxu1  ;;  %3973 = vmatpush1.bf16.msra.mxu0 %v6642_v58 }
 0x2b5   : > { %v3317_v54 = vadd.f32 %v6755_v18, %v2994_v29  ;;  %v3319_v30 = vadd.f32 %v6757_v19, %v3220_v33  ;;  %v2996_v31 = vpop.f32.mrb[9].mxu0  ;;  %v3222_v56 = vpop.f32.mrb[9].mxu1  ;;  %3974 = vmatprep.subr.bf16.mxu0 %v6645_v60 }
 0x2b6   : > { %v3318_v32 = vadd.f32 %v6761_v20, %v2996_v31  ;;  %v3320_v28 = vadd.f32 %v6763_v21, %v3222_v56  ;;  %v2998_v34 = vpop.f32.mrb[10].mxu0  ;;  %v3224_v35 = vpop.f32.mrb[10].mxu1  ;;  %3899 = vmatprep.mubr.bf16.mxu0 %v3434_v15 }
 0x2b7   : > { %v3321_v36 = vadd.f32 %v6755_v18, %v2998_v34  ;;  %v3323_v37 = vadd.f32 %v6757_v19, %v3224_v35  ;;  %v3000_v58 = vpop.f32.mrb[11].mxu0  ;;  %v3226_v38 = vpop.f32.mrb[11].mxu1  ;;  %3900 = vmatmul.mubr.bf16.gmra.mrb[36].mxu0 %v3433_v27  ;;  %v3381_v60 = vmax.f32 %v3317_v54, 0.0  ;;  %v3383_v42 = vmax.f32 %v3319_v30, 0.0 }
 0x2b8   : > { %v3322_v39 = vadd.f32 %v6761_v20, %v3000_v58  ;;  %v3324_v40 = vadd.f32 %v6763_v21, %v3226_v38  ;;  %3975 = vmatpush1.bf16.msra.mxu0 %v6650_v0  ;;  %v3382_v8 = vmax.f32 %v3318_v32, 0.0  ;;  %v3384_v13 = vmax.f32 %v3320_v28, 0.0 }
 0x2b9   : > { %v3385_v44 = vmax.f32 %v3321_v36, 0.0  ;;  %v3387_v46 = vmax.f32 %v3323_v37, 0.0  ;;  %3976 = vmatprep.subr.bf16.mxu0 %v6653_v2 }
 0x2ba   : > { %v3386_v22 = vmax.f32 %v3322_v39, 0.0  ;;  %v3388_v26 = vmax.f32 %v3324_v40, 0.0 }
 0x2bb   : > { %v3437_v15 = vpack.c.bf16 %v3385_v44, %v3381_v60  ;;  %v6803_v29 = vpack.c.bf16 %v3387_v46, %v3383_v42 }
 0x2bc   : > { %v3438_v27 = vpack.c.bf16 %v3386_v22, %v3382_v8  ;;  %v6805_v33 = vpack.c.bf16 %v3388_v26, %v3384_v13  ;;  %v3004_v31 = vpop.f32.mrb[12].mxu0  ;;  %v3230_v56 = vpop.f32.mrb[12].mxu1  ;;  %3977 = vmatpush1.bf16.msra.mxu0 %v6656_v4 }
 0x2bd   : > { %v3325_v0 = vadd.f32 %v6755_v18, %v3004_v31  ;;  %v3327_v54 = vadd.f32 %v6757_v19, %v3230_v56  ;;  %v3006_v30 = vpop.f32.mrb[13].mxu0  ;;  %v3232_v2 = vpop.f32.mrb[13].mxu1  ;;  %3978 = vmatprep.subr.bf16.mxu0 %v6659_v6 }
 0x2be   : > { %v3326_v32 = vadd.f32 %v6761_v20, %v3006_v30  ;;  %v3328_v28 = vadd.f32 %v6763_v21, %v3232_v2  ;;  %v3008_v34 = vpop.f32.mrb[14].mxu0  ;;  %v3234_v35 = vpop.f32.mrb[14].mxu1  ;;  %3909 = vmatprep.mubr.bf16.mxu0 %v3438_v27 }
 0x2bf   : > { %v3329_v36 = vadd.f32 %v6755_v18, %v3008_v34  ;;  %v3331_v37 = vadd.f32 %v6757_v19, %v3234_v35  ;;  %v3010_v4 = vpop.f32.mrb[15].mxu0  ;;  %v3236_v58 = vpop.f32.mrb[15].mxu1  ;;  %3910 = vmatmul.mubr.bf16.gmra.mrb[40].mxu0 %v3437_v15  ;;  %v3389_v6 = vmax.f32 %v3325_v0, 0.0  ;;  %v3391_v40 = vmax.f32 %v3327_v54, 0.0 }
 0x2c0   : > { %v3330_v38 = vadd.f32 %v6761_v20, %v3010_v4  ;;  %v3332_v39 = vadd.f32 %v6763_v21, %v3236_v58  ;;  %3979 = vmatpush1.bf16.msra.mxu0 %v6664_v10  ;;  %v3390_v44 = vmax.f32 %v3326_v32, 0.0  ;;  %v3392_v46 = vmax.f32 %v3328_v28, 0.0 }
 0x2c1   : > { %v3393_v60 = vmax.f32 %v3329_v36, 0.0  ;;  %v3395_v42 = vmax.f32 %v3331_v37, 0.0  ;;  %3980 = vmatprep.subr.bf16.mxu0 %v6667_v12 }
 0x2c2   : > { %v3394_v8 = vmax.f32 %v3330_v38, 0.0  ;;  %v3396_v13 = vmax.f32 %v3332_v39, 0.0 }
 0x2c3   : > { %v3441_v22 = vpack.c.bf16 %v3393_v60, %v3389_v6  ;;  %v6819_v26 = vpack.c.bf16 %v3395_v42, %v3391_v40 }
 0x2c4   : > { %v3442_v15 = vpack.c.bf16 %v3394_v8, %v3390_v44  ;;  %v6821_v27 = vpack.c.bf16 %v3396_v13, %v3392_v46  ;;  %v3014_v31 = vpop.f32.mrb[16].mxu0  ;;  %v3240_v56 = vpop.f32.mrb[16].mxu1  ;;  %3981 = vmatpush1.bf16.msra.mxu0 %v6670_v14 }
 0x2c5   : > { %v3333_v10 = vadd.f32 %v6755_v18, %v3014_v31  ;;  %v3335_v0 = vadd.f32 %v6757_v19, %v3240_v56  ;;  %v3016_v54 = vpop.f32.mrb[17].mxu0  ;;  %v3242_v12 = vpop.f32.mrb[17].mxu1  ;;  %3982 = vmatprep.subr.bf16.mxu0 %v6683_v41 }
 0x2c6   : > { %v3334_v30 = vadd.f32 %v6761_v20, %v3016_v54  ;;  %v3336_v2 = vadd.f32 %v6763_v21, %v3242_v12  ;;  %v3018_v32 = vpop.f32.mrb[18].mxu0  ;;  %v3244_v28 = vpop.f32.mrb[18].mxu1  ;;  %3919 = vmatprep.mubr.bf16.mxu0 %v3442_v15 }
 0x2c7   : > { %v3337_v34 = vadd.f32 %v6755_v18, %v3018_v32  ;;  %v3339_v35 = vadd.f32 %v6757_v19, %v3244_v28  ;;  %v3020_v14 = vpop.f32.mrb[19].mxu0  ;;  %v3246_v36 = vpop.f32.mrb[19].mxu1  ;;  %3920 = vmatmul.mubr.bf16.gmra.mrb[44].mxu0 %v3441_v22  ;;  %v3397_v41 = vmax.f32 %v3333_v10, 0.0  ;;  %v3399_v58 = vmax.f32 %v3335_v0, 0.0 }
 0x2c8   : > { %v3338_v37 = vadd.f32 %v6761_v20, %v3020_v14  ;;  %v3340_v4 = vadd.f32 %v6763_v21, %v3246_v36  ;;  %3983 = vmatpush1.bf16.msra.mxu0 %v6685_v43  ;;  %v3398_v6 = vmax.f32 %v3334_v30, 0.0  ;;  %v3400_v40 = vmax.f32 %v3336_v2, 0.0 }
 0x2c9   : > { %v3401_v38 = vmax.f32 %v3337_v34, 0.0  ;;  %v3403_v39 = vmax.f32 %v3339_v35, 0.0  ;;  %3984 = vmatprep.subr.bf16.mxu0 %v6689_v45 }
 0x2ca   : > { %v3402_v60 = vmax.f32 %v3338_v37, 0.0  ;;  %v3404_v42 = vmax.f32 %v3340_v4, 0.0 }
 0x2cb   : > { %v3445_v44 = vpack.c.bf16 %v3401_v38, %v3397_v41  ;;  %v3447_v46 = vpack.c.bf16 %v3403_v39, %v3399_v58 }
 0x2cc   : > { %v3446_v8 = vpack.c.bf16 %v3402_v60, %v3398_v6  ;;  %v3448_v13 = vpack.c.bf16 %v3404_v42, %v3400_v40  ;;  %v3024_v22 = vpop.f32.mrb[20].mxu0  ;;  %v3250_v15 = vpop.f32.mrb[20].mxu1  ;;  %3985 = vmatpush1.bf16.msra.mxu0 %v6691_v47 }
 0x2cd   : > { %v3341_v43 = vadd.f32 %v6755_v18, %v3024_v22  ;;  %v3343_v31 = vadd.f32 %v6757_v19, %v3250_v15  ;;  %v3026_v56 = vpop.f32.mrb[21].mxu0  ;;  %v3252_v10 = vpop.f32.mrb[21].mxu1  ;;  %3986 = vmatprep.subr.bf16.mxu0 %v6696_v48 }
 0x2ce   : > { %v3342_v45 = vadd.f32 %v6761_v20, %v3026_v56  ;;  %v3344_v0 = vadd.f32 %v6763_v21, %v3252_v10  ;;  %v3028_v54 = vpop.f32.mrb[22].mxu0  ;;  %v3254_v12 = vpop.f32.mrb[22].mxu1  ;;  %3929 = vmatprep.mubr.bf16.mxu0 %v3446_v8  ;;  %4042 = vmatprep.mubr.bf16.mxu1 %v3448_v13 }
 0x2cf   : > { %v3345_v30 = vadd.f32 %v6755_v18, %v3028_v54  ;;  %v3347_v47 = vadd.f32 %v6757_v19, %v3254_v12  ;;  %v3030_v2 = vpop.f32.mrb[23].mxu0  ;;  %v3256_v32 = vpop.f32.mrb[23].mxu1  ;;  %3930 = vmatmul.mubr.bf16.gmra.mrb[48].mxu0 %v3445_v44  ;;  %4043 = vmatmul.mubr.bf16.vlgmr.msra.gmra.mrb[32].mxu1 %v3447_v46  ;;  %v3405_v34 = vmax.f32 %v3341_v43, 0.0  ;;  %v3407_v35 = vmax.f32 %v3343_v31, 0.0 }
 0x2d0   : > { %v3346_v28 = vadd.f32 %v6761_v20, %v3030_v2  ;;  %v3348_v48 = vadd.f32 %v6763_v21, %v3256_v32  ;;  %3987 = vmatpush1.bf16.msra.mxu0 %v6698_v49  ;;  %v3406_v37 = vmax.f32 %v3342_v45, 0.0  ;;  %v3408_v4 = vmax.f32 %v3344_v0, 0.0 }
 0x2d1   : > { %v3409_v14 = vmax.f32 %v3345_v30, 0.0  ;;  %v3411_v36 = vmax.f32 %v3347_v47, 0.0  ;;  %3988 = vmatprep.subr.bf16.mxu0 %v6702_v51 }
 0x2d2   : > { %v3410_v41 = vmax.f32 %v3346_v28, 0.0  ;;  %v3412_v58 = vmax.f32 %v3348_v48, 0.0 }
 0x2d3   : > { %v3449_v38 = vpack.c.bf16 %v3409_v14, %v3405_v34  ;;  %v3451_v39 = vpack.c.bf16 %v3411_v36, %v3407_v35 }
 0x2d4   : > { %v3450_v6 = vpack.c.bf16 %v3410_v41, %v3406_v37  ;;  %v3452_v40 = vpack.c.bf16 %v3412_v58, %v3408_v4  ;;  %v3034_v60 = vpop.f32.mrb[24].mxu0  ;;  %v3260_v42 = vpop.f32.mrb[24].mxu1  ;;  %3989 = vmatpush1.bf16.msra.mxu0 %v6704_v52 }
 0x2d5   : > { %v3349_v49 = vadd.f32 %v6755_v18, %v3034_v60  ;;  %v3351_v44 = vadd.f32 %v6757_v19, %v3260_v42  ;;  %v3036_v46 = vpop.f32.mrb[25].mxu0  ;;  %v3262_v8 = vpop.f32.mrb[25].mxu1  ;;  %3990 = vmatprep.subr.bf16.mxu0 %v6708_v53 }
 0x2d6   : > { %v3350_v51 = vadd.f32 %v6761_v20, %v3036_v46  ;;  %v3352_v13 = vadd.f32 %v6763_v21, %v3262_v8  ;;  %v3038_v22 = vpop.f32.mrb[26].mxu0  ;;  %v3264_v15 = vpop.f32.mrb[26].mxu1  ;;  %3939 = vmatprep.mubr.bf16.mxu0 %v3450_v6  ;;  %4052 = vmatprep.mubr.bf16.mxu1 %v3452_v40 }
 0x2d7   : > { %v3353_v43 = vadd.f32 %v6755_v18, %v3038_v22  ;;  %v3355_v52 = vadd.f32 %v6757_v19, %v3264_v15  ;;  %v3040_v31 = vpop.f32.mrb[27].mxu0  ;;  %v3266_v56 = vpop.f32.mrb[27].mxu1  ;;  %3940 = vmatmul.mubr.bf16.gmra.mrb[52].mxu0 %v3449_v38  ;;  %4053 = vmatmul.mubr.bf16.gmra.mrb[36].mxu1 %v3451_v39  ;;  %v3413_v45 = vmax.f32 %v3349_v49, 0.0  ;;  %v3415_v0 = vmax.f32 %v3351_v44, 0.0 }
 0x2d8   : > { %v3354_v10 = vadd.f32 %v6761_v20, %v3040_v31  ;;  %v3356_v53 = vadd.f32 %v6763_v21, %v3266_v56  ;;  %3991 = vmatpush1.bf16.msra.mxu0 %v6710_v55  ;;  %v3414_v30 = vmax.f32 %v3350_v51, 0.0  ;;  %v3416_v47 = vmax.f32 %v3352_v13, 0.0 }
 0x2d9   : > { %v3417_v54 = vmax.f32 %v3353_v43, 0.0  ;;  %v3419_v12 = vmax.f32 %v3355_v52, 0.0  ;;  %3992 = vmatprep.subr.bf16.mxu0 %v6714_v50 }
 0x2da   : > { %v3418_v2 = vmax.f32 %v3354_v10, 0.0  ;;  %v3420_v32 = vmax.f32 %v3356_v53, 0.0 }
 0x2db   : > { %v3453_v28 = vpack.c.bf16 %v3417_v54, %v3413_v45  ;;  %v3455_v48 = vpack.c.bf16 %v3419_v12, %v3415_v0 }
 0x2dc   : > { %v3454_v34 = vpack.c.bf16 %v3418_v2, %v3414_v30  ;;  %v3456_v35 = vpack.c.bf16 %v3420_v32, %v3416_v47  ;;  %v3044_v14 = vpop.f32.mrb[28].mxu0  ;;  %v3270_v36 = vpop.f32.mrb[28].mxu1  ;;  %3993 = vmatpush1.bf16.msra.mxu0 %v6716_v57 }
 0x2dd   : > { %v3357_v55 = vadd.f32 %v6755_v18, %v3044_v14  ;;  %v3359_v37 = vadd.f32 %v6757_v19, %v3270_v36  ;;  %v3046_v4 = vpop.f32.mrb[29].mxu0  ;;  %v3272_v41 = vpop.f32.mrb[29].mxu1  ;;  %3994 = vmatprep.subr.bf16.mxu0 %v6720_v59 }
 0x2de   : > { %v3358_v50 = vadd.f32 %v6761_v20, %v3046_v4  ;;  %v3360_v58 = vadd.f32 %v6763_v21, %v3272_v41  ;;  %v3048_v38 = vpop.f32.mrb[30].mxu0  ;;  %v3274_v39 = vpop.f32.mrb[30].mxu1  ;;  %3949 = vmatprep.mubr.bf16.mxu0 %v3454_v34  ;;  %4062 = vmatprep.mubr.bf16.mxu1 %v3456_v35 }
 0x2df   : > { %v3361_v6 = vadd.f32 %v6755_v18, %v3048_v38  ;;  %v3363_v57 = vadd.f32 %v6757_v19, %v3274_v39  ;;  %v3050_v40 = vpop.f32.mrb[31].mxu0  ;;  %v3276_v60 = vpop.f32.mrb[31].mxu1  ;;  %3950 = vmatmul.mubr.bf16.gmra.mrb[56].mxu0 %v3453_v28  ;;  %4063 = vmatmul.mubr.bf16.gmra.mrb[40].mxu1 %v3455_v48  ;;  %v3421_v49 = vmax.f32 %v3357_v55, 0.0  ;;  %v3423_v44 = vmax.f32 %v3359_v37, 0.0 }
 0x2e0   : > { %v3362_v42 = vadd.f32 %v6761_v20, %v3050_v40  ;;  %v3364_v59 = vadd.f32 %v6763_v21, %v3276_v60  ;;  %3995 = vmatpush1.bf16.msra.mxu0 %v6722_v61  ;;  %v3422_v51 = vmax.f32 %v3358_v50, 0.0  ;;  %v3424_v18 = vmax.f32 %v3360_v58, 0.0  ;;  %v5957_v61 = vld [vmem:[#allocation11 + $0x40] sm:$0xff]   ;;  %v5964_v20 = vld [vmem:[#allocation11 + $0x18] sm:$0xff]  }
 0x2e1   : > { %v3425_v46 = vmax.f32 %v3361_v6, 0.0  ;;  %v3427_v8 = vmax.f32 %v3363_v57, 0.0  ;;  %3996 = vmatprep.subr.bf16.mxu0 %v6726_v62  ;;  %v5958_v62 = vld [vmem:[#allocation11] sm:$0xff]   ;;  %4929 = vmatprep.subr.bf16.mxu1 %v5957_v61 }
 0x2e2   : > { %v3426_v13 = vmax.f32 %v3362_v42, 0.0  ;;  %v3428_v19 = vmax.f32 %v3364_v59, 0.0  ;;  %4930 = vmatpush3.bf16.msra.mxu1 %v5958_v62  ;;  %v5965_v21 = vld [vmem:[#allocation11 + $0x60] sm:$0xff]  }
 0x2e3   : > { %v3457_v22 = vpack.c.bf16 %v3425_v46, %v3421_v49  ;;  %v3459_v15 = vpack.c.bf16 %v3427_v8, %v3423_v44 }
 0x2e4   : > { %v3458_v43 = vpack.c.bf16 %v3426_v13, %v3422_v51  ;;  %v3460_v52 = vpack.c.bf16 %v3428_v19, %v3424_v18  ;;  %3997 = vmatpush1.bf16.msra.mxu0 %v6728_v63  ;;  %v5959_v63 = vld [vmem:[#allocation11 + $0x48] sm:$0xff]  }
 0x2e5   : > { %3998 = vmatprep.subr.bf16.mxu0 %v6732_v1  ;;  %v5960_v1 = vld [vmem:[#allocation11 + $0x8] sm:$0xff]   ;;  %4931 = vmatprep.subr.bf16.mxu1 %v5959_v63 }
 0x2e6   : > { %3959 = vmatprep.mubr.bf16.mxu0 %v3458_v43  ;;  %4072 = vmatprep.mubr.bf16.mxu1 %v3460_v52 }
 0x2e7   : > { %3960 = vmatmul.mubr.bf16.gmra.mrb[60].mxu0 %v3457_v22  ;;  %4073 = vmatmul.mubr.bf16.gmra.mrb[44].mxu1 %v3459_v15 }
 0x2e8   : > { %3999 = vmatpush1.bf16.msra.mxu0 %v6734_v3  ;;  %4002 = vmatprep.mubr.bf16.mxu0 %v6775_v23  ;;  %v5961_v3 = vld [vmem:[#allocation11 + $0x50] sm:$0xff]   ;;  %v5967_v23 = vld [vmem:[#allocation11 + $0x68] sm:$0xff]  }
 0x2e9   : > { %4000 = vmatprep.subr.bf16.mxu0 %v6738_v5  ;;  %4932 = vmatpush3.bf16.msra.mxu1 %v5960_v1  ;;  %v5962_v5 = vld [vmem:[#allocation11 + $0x10] sm:$0xff]  }
 0x2ea   : > { %4933 = vmatprep.subr.bf16.mxu1 %v5961_v3 }
 0x2ec   : > { %4001 = vmatpush1.bf16.msra.mxu0 %v6740_v7  ;;  %v5963_v7 = vld [vmem:[#allocation11 + $0x58] sm:$0xff]  }
 0x2ed   : > { %4934 = vmatpush3.bf16.msra.mxu1 %v5962_v5 }
 0x2ee   : > { %4935 = vmatprep.subr.bf16.mxu1 %v5963_v7 }
 0x2ef   : > { %4003 = vmatmul.mubr.bf16.vlgmr.msra.gmra.mrb[32].mxu0 %v6773_v17  ;;  %v5966_v17 = vld [vmem:[#allocation11 + $0x20] sm:$0xff]  }
 0x2f0   : > { %4012 = vmatprep.mubr.bf16.mxu0 %v6789_v25  ;;  %v5969_v25 = vld [vmem:[#allocation11 + $0x70] sm:$0xff]  }
 0x2f1   : > { %4936 = vmatpush3.bf16.msra.mxu1 %v5964_v20 }
 0x2f2   : > { %4937 = vmatprep.subr.bf16.mxu1 %v5965_v21 }
 0x2f5   : > { %4938 = vmatpush3.bf16.msra.mxu1 %v5966_v17 }
 0x2f6   : > { %4939 = vmatprep.subr.bf16.mxu1 %v5967_v23 }
 0x2f7   : > { %4013 = vmatmul.mubr.bf16.gmra.mrb[36].mxu0 %v6787_v24  ;;  %v5968_v24 = vld [vmem:[#allocation11 + $0x28] sm:$0xff]  }
 0x2f8   : > { %4022 = vmatprep.mubr.bf16.mxu0 %v6805_v33  ;;  %v5971_v33 = vld [vmem:[#allocation11 + $0x78] sm:$0xff]  }
 0x2f9   : > { %4940 = vmatpush3.bf16.msra.mxu1 %v5968_v24 }
 0x2fa   : > { %4941 = vmatprep.subr.bf16.mxu1 %v5969_v25 }
 0x2ff   : > { %4023 = vmatmul.mubr.bf16.gmra.mrb[40].mxu0 %v6803_v29  ;;  %v5970_v29 = vld [vmem:[#allocation11 + $0x30] sm:$0xff]  }
 0x300   : > { %4032 = vmatprep.mubr.bf16.mxu0 %v6821_v27  ;;  %4942 = vmatpush3.bf16.msra.mxu1 %v5970_v29  ;;  %v3525_v27 = vld [vmem:[%s7081_s6] sm:$0x3] }
 0x301   : > { %4943 = vmatprep.subr.bf16.mxu1 %v5971_v33  ;;  %v6889_v31 = vrot.slane %v3525_v27, %v3283_v11  ;;  %v6893_v56 = vrot.slane %v3525_v27, %v3287_v16 }
 0x307   : > { %4033 = vmatmul.mubr.bf16.gmra.mrb[44].mxu0 %v6819_v26  ;;  %v5972_v26 = vld [vmem:[#allocation11 + $0x38] sm:$0xff]  }
 0x308   : > { %4944 = vmatpush3.bf16.msra.mxu1 %v5972_v26 }
 0x3a2   : > { %v3931_v10 = vpop.f32.mrb[48].mxu0  ;;  %v4044_v53 = vpop.f32.mrb[32].mxu1 }
 0x3a3   : > { %v3932_v45 = vadd.f32 %v3931_v10, %v6889_v31  ;;  %v3933_v0 = vpop.f32.mrb[49].mxu0  ;;  %v4046_v54 = vpop.f32.mrb[33].mxu1 }
 0x3a4   : > { %v3934_v12 = vadd.f32 %v3933_v0, %v6893_v56  ;;  %v3935_v30 = vpop.f32.mrb[50].mxu0  ;;  %v4048_v47 = vpop.f32.mrb[34].mxu1 }
 0x3a5   : > { %v6897_v2 = vadd.f32 %v4044_v53, %v3932_v45  ;;  %v3936_v32 = vadd.f32 %v3935_v30, %v6889_v31  ;;  %v3937_v11 = vpop.f32.mrb[51].mxu0  ;;  %v4050_v28 = vpop.f32.mrb[35].mxu1 }
 0x3a6   : > { %v6900_v48 = vadd.f32 %v4046_v54, %v3934_v12  ;;  %v3938_v9 = vadd.f32 %v3937_v11, %v6893_v56 }
 0x3a7   : > { %v6903_v16 = vadd.f32 %v4048_v47, %v3936_v32 }
 0x3a8   : > { %v6905_v34 = vadd.f32 %v4050_v28, %v3938_v9 }
 0x3a9   : > { %v4091_v35 = vpack.c.bf16 %v6903_v16, %v6897_v2 }
 0x3aa   : > { %v4092_v14 = vpack.c.bf16 %v6905_v34, %v6900_v48  ;;  %v3941_v36 = vpop.f32.mrb[52].mxu0  ;;  %v4054_v55 = vpop.f32.mrb[36].mxu1 }
 0x3ab   : > { %v3942_v37 = vadd.f32 %v3941_v36, %v6889_v31  ;;  %v3943_v4 = vpop.f32.mrb[53].mxu0  ;;  %v4056_v41 = vpop.f32.mrb[37].mxu1 }
 0x3ac   : > { %v3944_v50 = vadd.f32 %v3943_v4, %v6893_v56  ;;  %v3945_v58 = vpop.f32.mrb[54].mxu0  ;;  %v4058_v38 = vpop.f32.mrb[38].mxu1 }
 0x3ad   : > { %v6913_v39 = vadd.f32 %v4054_v55, %v3942_v37  ;;  %v3946_v6 = vadd.f32 %v3945_v58, %v6889_v31  ;;  %v3947_v57 = vpop.f32.mrb[55].mxu0  ;;  %v4060_v40 = vpop.f32.mrb[39].mxu1 }
 0x3ae   : > { %v6916_v60 = vadd.f32 %v4056_v41, %v3944_v50  ;;  %v3948_v42 = vadd.f32 %v3947_v57, %v6893_v56 }
 0x3af   : > { %v6919_v59 = vadd.f32 %v4058_v38, %v3946_v6 }
 0x3b0   : > { %v6921_v49 = vadd.f32 %v4060_v40, %v3948_v42 }
 0x3b1   : > { %v4093_v44 = vpack.c.bf16 %v6919_v59, %v6913_v39 }
 0x3b2   : > { %v4094_v46 = vpack.c.bf16 %v6921_v49, %v6916_v60  ;;  %v3951_v8 = vpop.f32.mrb[56].mxu0  ;;  %v4064_v51 = vpop.f32.mrb[40].mxu1 }
 0x3b3   : > { %v3952_v18 = vadd.f32 %v3951_v8, %v6889_v31  ;;  %v3953_v13 = vpop.f32.mrb[57].mxu0  ;;  %v4066_v19 = vpop.f32.mrb[41].mxu1 }
 0x3b4   : > { %v3954_v22 = vadd.f32 %v3953_v13, %v6893_v56  ;;  %v3955_v15 = vpop.f32.mrb[58].mxu0  ;;  %v4068_v43 = vpop.f32.mrb[42].mxu1 }
 0x3b5   : > { %v6929_v52 = vadd.f32 %v4064_v51, %v3952_v18  ;;  %v3956_v61 = vadd.f32 %v3955_v15, %v6889_v31  ;;  %v3957_v62 = vpop.f32.mrb[59].mxu0  ;;  %v4070_v63 = vpop.f32.mrb[43].mxu1 }
 0x3b6   : > { %v6932_v1 = vadd.f32 %v4066_v19, %v3954_v22  ;;  %v3958_v3 = vadd.f32 %v3957_v62, %v6893_v56 }
 0x3b7   : > { %v6935_v5 = vadd.f32 %v4068_v43, %v3956_v61 }
 0x3b8   : > { %v6937_v7 = vadd.f32 %v4070_v63, %v3958_v3 }
 0x3b9   : > { %v4095_v20 = vpack.c.bf16 %v6935_v5, %v6929_v52 }
 0x3ba   : > { %v4096_v21 = vpack.c.bf16 %v6937_v7, %v6932_v1  ;;  %v3961_v17 = vpop.f32.mrb[60].mxu0  ;;  %v4074_v23 = vpop.f32.mrb[44].mxu1 }
 0x3bb   : > { %v3962_v24 = vadd.f32 %v3961_v17, %v6889_v31  ;;  %v3963_v25 = vpop.f32.mrb[61].mxu0  ;;  %v4076_v29 = vpop.f32.mrb[45].mxu1 }
 0x3bc   : > { %v3964_v33 = vadd.f32 %v3963_v25, %v6893_v56  ;;  %v3965_v26 = vpop.f32.mrb[62].mxu0  ;;  %v4078_v27 = vpop.f32.mrb[46].mxu1 }
 0x3bd   : > { %v6945_v10 = vadd.f32 %v4074_v23, %v3962_v24  ;;  %v3966_v53 = vadd.f32 %v3965_v26, %v6889_v31  ;;  %v3967_v45 = vpop.f32.mrb[63].mxu0  ;;  %v4080_v0 = vpop.f32.mrb[47].mxu1 }
 0x3be   : > { %v4077_v54 = vadd.f32 %v4076_v29, %v3964_v33  ;;  %v3968_v12 = vadd.f32 %v3967_v45, %v6893_v56 }
 0x3bf   : > { %v4079_v30 = vadd.f32 %v4078_v27, %v3966_v53 }
 0x3c0   : > { %v4081_v47 = vadd.f32 %v4080_v0, %v3968_v12 }
 0x3c1   : > { %v4097_v32 = vpack.c.bf16 %v4079_v30, %v6945_v10 }
 0x3c2   : > { %v4098_v11 = vpack.c.bf16 %v4081_v47, %v4077_v54  ;;  %v4004_v28 = vpop.f32.mrb[32].mxu0 }
 0x3c3   : > { %v4006_v9 = vpop.f32.mrb[33].mxu0  ;;  %v5025_v55 = vadd.f32 %v4004_v28, %v6889_v31 }
 0x3c4   : > { %v4008_v36 = vpop.f32.mrb[34].mxu0  ;;  %v5026_v41 = vadd.f32 %v4006_v9, %v6893_v56 }
 0x3c5   : > { %v5027_v37 = vadd.f32 %v4008_v36, %v6889_v31  ;;  %v4010_v4 = vpop.f32.mrb[35].mxu0 }
 0x3c6   : > { %v5028_v50 = vadd.f32 %v4010_v4, %v6893_v56 }
 0x3c7   : > { %v4083_v58 = vpack.c.bf16 %v5027_v37, %v5025_v55 }
 0x3c8   : > { %v4084_v38 = vpack.c.bf16 %v5028_v50, %v5026_v41 }
 0x3ca   : > { %v4014_v6 = vpop.f32.mrb[36].mxu0  ;;  %4266 = vmatprep.mubr.bf16.mxu1 %v4084_v38 }
 0x3cb   : > { %v4016_v57 = vpop.f32.mrb[37].mxu0  ;;  %4267 = vmatmul.mubr.bf16.vlgmr.msra.gmra.mrb[48].mxu1 %v4083_v58  ;;  %v5029_v42 = vadd.f32 %v4014_v6, %v6889_v31 }
 0x3cc   : > { %v4018_v40 = vpop.f32.mrb[38].mxu0  ;;  %v5030_v18 = vadd.f32 %v4016_v57, %v6893_v56 }
 0x3cd   : > { %v5031_v8 = vadd.f32 %v4018_v40, %v6889_v31  ;;  %v4020_v51 = vpop.f32.mrb[39].mxu0 }
 0x3ce   : > { %v5032_v13 = vadd.f32 %v4020_v51, %v6893_v56 }
 0x3cf   : > { %v4085_v19 = vpack.c.bf16 %v5031_v8, %v5029_v42 }
 0x3d0   : > { %v4086_v22 = vpack.c.bf16 %v5032_v13, %v5030_v18 }
 0x3d2   : > { %v4024_v15 = vpop.f32.mrb[40].mxu0  ;;  %4274 = vmatprep.mubr.bf16.mxu1 %v4086_v22 }
 0x3d3   : > { %v4026_v43 = vpop.f32.mrb[41].mxu0  ;;  %4275 = vmatmul.mubr.bf16.gmra.mrb[52].mxu1 %v4085_v19  ;;  %v5033_v62 = vadd.f32 %v4024_v15, %v6889_v31 }
 0x3d4   : > { %v4028_v61 = vpop.f32.mrb[42].mxu0  ;;  %v5034_v17 = vadd.f32 %v4026_v43, %v6893_v56 }
 0x3d5   : > { %v5035_v63 = vadd.f32 %v4028_v61, %v6889_v31  ;;  %v4030_v3 = vpop.f32.mrb[43].mxu0 }
 0x3d6   : > { %v5036_v23 = vadd.f32 %v4030_v3, %v6893_v56 }
 0x3d7   : > { %v4087_v24 = vpack.c.bf16 %v5035_v63, %v5033_v62 }
 0x3d8   : > { %v4088_v25 = vpack.c.bf16 %v5036_v23, %v5034_v17 }
 0x3da   : > { %v4034_v29 = vpop.f32.mrb[44].mxu0  ;;  %4282 = vmatprep.mubr.bf16.mxu1 %v4088_v25 }
 0x3db   : > { %v4036_v33 = vpop.f32.mrb[45].mxu0  ;;  %4283 = vmatmul.mubr.bf16.gmra.mrb[56].mxu1 %v4087_v24  ;;  %v5037_v27 = vadd.f32 %v4034_v29, %v6889_v31 }
 0x3dc   : > { %v4038_v26 = vpop.f32.mrb[46].mxu0  ;;  %v5038_v45 = vadd.f32 %v4036_v33, %v6893_v56 }
 0x3dd   : > { %v5039_v10 = vadd.f32 %v4038_v26, %v6889_v31  ;;  %v4040_v53 = vpop.f32.mrb[47].mxu0 }
 0x3de   : > { %v5040_v0 = vadd.f32 %v4040_v53, %v6893_v56  ;;  %v6988_v56 = vld [vmem:[%s7083_s8] ss:$0 sm:$0xff] }
 0x3df   : > { %v4089_v54 = vpack.c.bf16 %v5039_v10, %v5037_v27 }
 0x3e0   : > { %v4090_v12 = vpack.c.bf16 %v5040_v0, %v5038_v45 }
 0x3e2   : > { %4290 = vmatprep.mubr.bf16.mxu1 %v4090_v12 }
 0x3e3   : > { %4291 = vmatmul.mubr.bf16.gmra.mrb[60].mxu1 %v4089_v54 }
 0x3e4   : > { %4298 = vmatprep.mubr.bf16.mxu1 %v4092_v14 }
 0x3eb   : > { %4299 = vmatmul.mubr.bf16.gmra.mrb[64].mxu1 %v4091_v35 }
 0x3ec   : > { %4306 = vmatprep.mubr.bf16.mxu1 %v4094_v46 }
 0x3f3   : > { %4307 = vmatmul.mubr.bf16.gmra.mrb[68].mxu1 %v4093_v44 }
 0x3f4   : > { %4314 = vmatprep.mubr.bf16.mxu1 %v4096_v21 }
 0x3fb   : > { %4315 = vmatmul.mubr.bf16.gmra.mrb[72].mxu1 %v4095_v20 }
 0x3fc   : > { %4322 = vmatprep.mubr.bf16.mxu1 %v4098_v11 }
 0x403   : > { %4323 = vmatmul.mubr.bf16.gmra.mrb[76].mxu1 %v4097_v32 }
 0x49e   : > { %v4945_v31 = vpop.f32.mrb[48].mxu1 }
 0x49f   : > { %v4946_v2 = vpop.f32.mrb[49].mxu1 }
 0x4a0   : > { %v4947_v48 = vadd.f32 %v4946_v2, %v4945_v31  ;;  %v4948_v16 = vpop.f32.mrb[50].mxu1 }
 0x4a1   : > { %v4949_v34 = vpop.f32.mrb[51].mxu1 }
 0x4a2   : > { %v4269_v35 = vadd.f32 %v4947_v48, %v6988_v56  ;;  %v4950_v14 = vadd.f32 %v4949_v34, %v4948_v16 }
 0x4a4   : > { %4331 = vst [vmem:[%s6991_s19] sm:$0xff] %v4269_v35  ;;  %v4272_v39 = vadd.f32 %v4950_v14, %v6988_v56 }
 0x4a6   : > { %4332 = vst [vmem:[%s6991_s19 + $0x8] sm:$0xff] %v4272_v39  ;;  %v4951_v60 = vpop.f32.mrb[52].mxu1 }
 0x4a7   : > { %v4952_v59 = vpop.f32.mrb[53].mxu1 }
 0x4a8   : > { %v4953_v49 = vadd.f32 %v4952_v59, %v4951_v60  ;;  %v4954_v44 = vpop.f32.mrb[54].mxu1 }
 0x4a9   : > { %v4955_v46 = vpop.f32.mrb[55].mxu1 }
 0x4aa   : > { %v4277_v52 = vadd.f32 %v4953_v49, %v6988_v56  ;;  %v4956_v1 = vadd.f32 %v4955_v46, %v4954_v44 }
 0x4ac   : > { %4333 = vst [vmem:[%s6991_s19 + $0x10] sm:$0xff] %v4277_v52  ;;  %v4280_v5 = vadd.f32 %v4956_v1, %v6988_v56 }
 0x4ae   : > { %4334 = vst [vmem:[%s6991_s19 + $0x18] sm:$0xff] %v4280_v5  ;;  %v4957_v7 = vpop.f32.mrb[56].mxu1 }
 0x4af   : > { %v4958_v20 = vpop.f32.mrb[57].mxu1 }
 0x4b0   : > { %v4959_v21 = vadd.f32 %v4958_v20, %v4957_v7  ;;  %v4960_v30 = vpop.f32.mrb[58].mxu1 }
 0x4b1   : > { %v4961_v47 = vpop.f32.mrb[59].mxu1 }
 0x4b2   : > { %v4285_v32 = vadd.f32 %v4959_v21, %v6988_v56  ;;  %v4962_v11 = vadd.f32 %v4961_v47, %v4960_v30 }
 0x4b4   : > { %4335 = vst [vmem:[%s6991_s19 + $0x20] sm:$0xff] %v4285_v32  ;;  %v4288_v28 = vadd.f32 %v4962_v11, %v6988_v56 }
 0x4b6   : > { %4336 = vst [vmem:[%s6991_s19 + $0x28] sm:$0xff] %v4288_v28  ;;  %v4963_v9 = vpop.f32.mrb[60].mxu1 }
 0x4b7   : > { %v4964_v36 = vpop.f32.mrb[61].mxu1 }
 0x4b8   : > { %v4965_v55 = vadd.f32 %v4964_v36, %v4963_v9  ;;  %v4966_v37 = vpop.f32.mrb[62].mxu1 }
 0x4b9   : > { %v4967_v4 = vpop.f32.mrb[63].mxu1 }
 0x4ba   : > { %v4293_v41 = vadd.f32 %v4965_v55, %v6988_v56  ;;  %v4968_v50 = vadd.f32 %v4967_v4, %v4966_v37 }
 0x4bc   : > { %4337 = vst [vmem:[%s6991_s19 + $0x30] sm:$0xff] %v4293_v41  ;;  %v4296_v58 = vadd.f32 %v4968_v50, %v6988_v56 }
 0x4be   : > { %4338 = vst [vmem:[%s6991_s19 + $0x38] sm:$0xff] %v4296_v58  ;;  %v4969_v38 = vpop.f32.mrb[64].mxu1 }
 0x4bf   : > { %v4970_v6 = vpop.f32.mrb[65].mxu1 }
 0x4c0   : > { %v4971_v57 = vadd.f32 %v4970_v6, %v4969_v38  ;;  %v4972_v40 = vpop.f32.mrb[66].mxu1 }
 0x4c1   : > { %v4973_v42 = vpop.f32.mrb[67].mxu1 }
 0x4c2   : > { %v4301_v8 = vadd.f32 %v4971_v57, %v6988_v56  ;;  %v4974_v51 = vadd.f32 %v4973_v42, %v4972_v40 }
 0x4c4   : > { %4339 = vst [vmem:[%s6991_s19 + $0x40] sm:$0xff] %v4301_v8  ;;  %v4304_v18 = vadd.f32 %v4974_v51, %v6988_v56 }
 0x4c6   : > { %4340 = vst [vmem:[%s6991_s19 + $0x48] sm:$0xff] %v4304_v18  ;;  %v4975_v13 = vpop.f32.mrb[68].mxu1 }
 0x4c7   : > { %v4976_v19 = vpop.f32.mrb[69].mxu1 }
 0x4c8   : > { %v4977_v22 = vadd.f32 %v4976_v19, %v4975_v13  ;;  %v4978_v15 = vpop.f32.mrb[70].mxu1 }
 0x4c9   : > { %v4979_v43 = vpop.f32.mrb[71].mxu1 }
 0x4ca   : > { %v4309_v61 = vadd.f32 %v4977_v22, %v6988_v56  ;;  %v4980_v62 = vadd.f32 %v4979_v43, %v4978_v15 }
 0x4cc   : > { %4341 = vst [vmem:[%s6991_s19 + $0x50] sm:$0xff] %v4309_v61  ;;  %v4312_v63 = vadd.f32 %v4980_v62, %v6988_v56 }
 0x4ce   : > { %4342 = vst [vmem:[%s6991_s19 + $0x58] sm:$0xff] %v4312_v63  ;;  %v4981_v3 = vpop.f32.mrb[72].mxu1 }
 0x4cf   : > { %v4982_v17 = vpop.f32.mrb[73].mxu1 }
 0x4d0   : > { %v4983_v23 = vadd.f32 %v4982_v17, %v4981_v3  ;;  %v4984_v24 = vpop.f32.mrb[74].mxu1 }
 0x4d1   : > { %v4985_v25 = vpop.f32.mrb[75].mxu1 }
 0x4d2   : > { %v4317_v29 = vadd.f32 %v4983_v23, %v6988_v56  ;;  %v4986_v33 = vadd.f32 %v4985_v25, %v4984_v24 }
 0x4d4   : > { %4343 = vst [vmem:[%s6991_s19 + $0x60] sm:$0xff] %v4317_v29  ;;  %v4320_v26 = vadd.f32 %v4986_v33, %v6988_v56 }
 0x4d6   : > { %4344 = vst [vmem:[%s6991_s19 + $0x68] sm:$0xff] %v4320_v26  ;;  %v4987_v27 = vpop.f32.mrb[76].mxu1 }
 0x4d7   : > { %v4988_v10 = vpop.f32.mrb[77].mxu1 }
 0x4d8   : > { %v4989_v53 = vadd.f32 %v4988_v10, %v4987_v27  ;;  %v4990_v45 = vpop.f32.mrb[78].mxu1 }
 0x4d9   : > { %v4991_v0 = vpop.f32.mrb[79].mxu1 }
 0x4da   : > { %v4325_v54 = vadd.f32 %v4989_v53, %v6988_v56  ;;  %v4992_v12 = vadd.f32 %v4991_v0, %v4990_v45 }
 0x4dc   : > { %4345 = vst [vmem:[%s6991_s19 + $0x70] sm:$0xff] %v4325_v54  ;;  %v4328_v31 = vadd.f32 %v4992_v12, %v6988_v56 }
 0x4de   : > { %4346 = vst [vmem:[%s6991_s19 + $0x78] sm:$0xff] %v4328_v31 }
 0x4df   : > { %6158 = shalt.err (!%p6155_p8)
}
 0x4e0   : > { %s6159_s21 = scalar_lea.hbm %s7026_s2, 2048  ;;  %s6163_s26 = scalar_lea.hbm %s7122_s20, 4096 }
 0x4e1   : > { %p6160_p11 = scmp.ne.s32.totalorder %s7026_s2, %s6159_s21  ;;  %p6164_p1 = scmp.lt.u32.totalorder %s7026_s2, %s7122_s20 }
 0x4e2   : > { %p6165_p2 = scmp.lt.u32.totalorder %s6163_s26, %s6159_s21  ;;  %p6167_p0 = scmp.lt.u32.totalorder %s6159_s21, %s7026_s2 }
 0x4e3   : > { %p6161_p7 = pnand %p6160_p11, %p6462_p3 }
 0x4e4   : > { %p6166_p13 = por %p6165_p2, %p6164_p1 }
 0x4e5   : > { %p6162_p12 = pneg %p6161_p7 }
 0x4e6   : > { %p6168_p4 = por %p6167_p0, %p6166_p13 }
 0x4e8   : > { %p6169_p6 = pnand %p6168_p4, %p6162_p12 }
 0x4ea   : > { %6172 = shalt.err (!%p6169_p6)
}
 0x4eb   : > { %s6242_s19 = smov 128   ;;  %s6243_s22 = smov 8  }
 0x4ec   : > { %5301 = dma.vmem_to_hbm [thread:$0]  (%p6462_p3), %s7028_s23, 2048, %s7026_s2, %s4348_s13, %s6242_s19, %s6242_s19, %s6243_s22  }
 0x4ed PF: > { %s7123_s0 = sld [smem:[#allocation20_spill]]  ;;  %s7124_s28 = sld [smem:[#allocation21_spill]] }
 0x4ee   : > { %p7126_p5 = scmp.ge.s32.totalorder %s6227_s12, 2 }
 0x4f3   : > { %s4376_s14 = sand.u32 1, %s7123_s0   ;;  %p7125_p10 = scmp.ne.s32.totalorder %s7124_s28, 0 }
 0x4f4   : > { %s4377_s17 = scalar_lea.sflag [#allocation4], %s4376_s14 }
 0x4f5   : > { %p5324_p9 = pnand %p7126_p5, %p7125_p10 }
 0x4f7   : > { %6210 = dma.done.wait (!%p5324_p9), %s4377_s17, 2048  }
 0x4f8   : > { %6212 = vsyncadd (!%p5324_p9), %s4377_s17, 4294965248  ;;  %p27_p8 = scmp.ge.s32.totalorder %s6449_s9, 4   ;;  %s7127_s30 = smov %s6219_s10 }
 0x4f9   : > { %s7128_s10 = smov %s6223_s11  ;;  %s7129_s11 = smov %s6458_s27 }
 0x4fa   : > { %s7130_s12 = smov %s6449_s9  ;;  %29 = sbr.rel (!%p27_p8) target bundleno = 14 (0xe), region = 130 }
 0x501   :  { %4382 = vsyncpa [#allocation3], 1 }
 0x502   :  { %4384 = vsyncpa [#allocation3 + $0x1], 1 }
 0x503   :  { %4385 = vsyncpa [#allocation6], 1 }
 0x504   :  { %4387 = vsyncpa [#allocation6 + $0x1], 1 }
 0x505   :  { %4388 = vsyncpa [#allocation9], 1 }
 0x506   :  { %4389 = vsyncpa [#allocation12], 1 }
 0x507   :  { %4390 = vsyncpa [#allocation4], 1 }
 0x508   :  { %4392 = vsyncpa [#allocation4 + $0x1], 1 }

</bundles_post_ra>
